<compile_context>
chip_gen: v5e
topology: v5e:2x2
jax: 0.10.0
libtpu: 0.0.40
codegen_flags: <defaults>
</compile_context>

<pallas_src>
import functools

import jax
import jax.numpy as jnp
import numpy as np
from jax.experimental import pallas as pl
from jax.experimental.pallas import tpu as pltpu


# ----------------------------- glue: positional encoding -----------------------------
def positional_encode(points, base_frequency, num_powers):
    """points (..., C) -> (..., C*(2*num_powers + 1)), matching the torch implementation."""
    result = [points]
    for p in range(num_powers):
        cur_freq = base_frequency * (2 ** p)
        omega = cur_freq * np.pi * 2.0
        result.append(jnp.sin(points * omega))
        result.append(jnp.cos(points * omega))
    return jnp.concatenate(result, axis=-1)


def _round_up(x, m):
    return ((x + m - 1) // m) * m


def _block_diag(w, P):
    """(K, N) -> (P*K, P*N) with `w` repeated P times on the diagonal."""
    if P == 1:
        return w
    return jnp.kron(jnp.eye(P, dtype=w.dtype), w)


# ----------------------------- Pallas kernel -----------------------------
def _resnet_fc_kernel(*refs, n_blocks, activation, per_point, ph):
    if per_point:
        (inp_ref, w_fused_ref, b_fused_ref,
         w0_ref, b0_ref, w1_ref, b1_ref, w_out_ref, b_out_ref,
         out_ref, penult_ref) = refs
    else:
        (enc_ref, z_ref, w_in_ref, b_in_ref,
         w0_ref, b0_ref, w1_ref, b1_ref, w_out_ref, b_out_ref,
         out_ref, penult_ref) = refs

    def act(v):
        if activation == "relu":
            return jnp.maximum(v, 0.0)
        return v * jax.nn.sigmoid(v)   # swish

    f32, bf16 = jnp.float32, jnp.bfloat16

    if per_point:
        # One fused, lane-dense matmul computes lin_in(points) and all lin_z(features):
        # lanes [g*ph + p*H : g*ph + (p+1)*H] hold projection g for point slot p.
        h = jnp.dot(inp_ref[0], w_fused_ref[...],
                    preferred_element_type=f32) + b_fused_ref[...]
        x = h[:, :ph]                                                  # (TMP, 128) f32
    else:
        x = jnp.dot(enc_ref[0], w_in_ref[...],
                    preferred_element_type=f32) + b_in_ref[...]        # (TMP, 128) f32

    # resnet blocks (static unrolled; all packed weights resident in VMEM)
    for blk in range(n_blocks):
        if per_point:
            x = x + h[:, (blk + 1) * ph:(blk + 2) * ph]                # 128-lane-aligned slice
        else:
            x = x + z_ref[0, blk:blk + 1, :]                           # hoisted per-example row
        # ResnetBlockFC (d_in == d_out == d_hidden -> identity shortcut)
        net = jnp.dot(act(x).astype(bf16), w0_ref[blk],
                      preferred_element_type=f32) + b0_ref[blk]
        dx = jnp.dot(act(net).astype(bf16), w1_ref[blk],
                     preferred_element_type=f32) + b1_ref[blk]
        x = x + dx

    penult_ref[0] = x.astype(penult_ref.dtype)
    out_ref[0] = (jnp.dot(act(x).astype(bf16), w_out_ref[...],
                          preferred_element_type=f32) + b_out_ref[...]).astype(out_ref.dtype)


# ----------------------------- wrapper -----------------------------
def resnet_fc_forward(points, features, params, *,
                      d_in=4, d_hidden=32, d_out=16, d_latent=16,
                      n_blocks=3, pos_encoding_freqs=0, activation="relu",
                      max_packed_rows=1024, out_dtype=jnp.float32):
    """Forward pass of ResnetFC. Returns (output, penult) like the torch module."""
    assert activation in ("relu", "swish")
    no_batch = points.ndim == 2
    if no_batch:
        points = points[None]
        features = features[None]

    B, N, _ = points.shape
    assert points.shape[-1] == d_in
    assert features.shape[-1] == d_latent
    per_point = features.ndim == 3
    if per_point:
        assert features.shape[1] == N

    # Fourier positional encoding (f32 elementwise in XLA); encoded points stream as bf16.
    pts = points.astype(jnp.float32)
    if pos_encoding_freqs > 0:
        pts = positional_encode(pts, 0.1, pos_encoding_freqs)
    n_enc = pts.shape[-1]

    w_in, b_in, wz, bz, w0, b0, w1, b1, w_out, b_out = params
    bf16, f32 = jnp.bfloat16, jnp.float32

    # Lane-packing factor: P consecutive points share one 128-lane row (P=4 for d_hidden=32).
    P = 128 // d_hidden if (d_hidden <= 128 and 128 % d_hidden == 0) else 1
    PH = P * d_hidden
    G = n_blocks + 1

    # Packed (block-diagonal) weights / tiled biases, built once.
    w0_p = jnp.stack([_block_diag(w0[k].astype(f32), P) for k in range(n_blocks)]).astype(bf16)
    w1_p = jnp.stack([_block_diag(w1[k].astype(f32), P) for k in range(n_blocks)]).astype(bf16)
    w_out_p = _block_diag(w_out.astype(f32), P).astype(bf16)           # (PH, P*d_out)
    b0_p = jnp.tile(b0.astype(f32), (1, 1, P))                         # (n_blocks, 1, PH)
    b1_p = jnp.tile(b1.astype(f32), (1, 1, P))
    b_out_p = jnp.tile(b_out.astype(f32), (1, P))                      # (1, P*d_out)

    # Row tiling: pad packed rows to a 128-row quantum (not to a multiple of TMP).
    Np = -(-N // P)
    Np_pad = _round_up(Np, 128)
    TMP = 128
    for cand in (1024, 512, 256, 128):
        if cand <= max_packed_rows and Np_pad % cand == 0:
            TMP = cand
            break
    # Guarantee >= 2 grid steps so both v7x TensorCores get work.
    while B * (Np_pad // TMP) < 2 and TMP >= 16:
        TMP //= 2
    NT = Np_pad // TMP
    N_pad = Np_pad * P
    grid = (B, NT)

    def _pack_rows(arr):
        """(B, N, C) -> (B, Np_pad, P*C); zero-pad then free row-major reshape."""
        C = arr.shape[-1]
        if N_pad != N:
            arr = jnp.pad(arr, ((0, 0), (0, N_pad - N), (0, 0)))
        return arr.reshape(B, Np_pad, P * C)

    def _full_spec(arr):
        nd = arr.ndim
        return pl.BlockSpec(arr.shape, lambda b, n: (0,) * nd)

    if per_point:
        C = n_enc + d_latent
        inp = _pack_rows(jnp.concatenate([pts, features.astype(f32)], axis=-1).astype(bf16))
        # Fused [lin_in | lin_z_0 .. lin_z_{n-1}] weight producing a lane-dense packed output.
        W_base = jnp.zeros((C, G * d_hidden), f32)
        W_base = W_base.at[:n_enc, :d_hidden].set(w_in.astype(f32))
        for k in range(n_blocks):
            W_base = W_base.at[n_enc:, (k + 1) * d_hidden:(k + 2) * d_hidden].set(wz[k].astype(f32))
        Wk = _block_diag(W_base, P)                                    # (P*C, P*G*H)
        w_fused = (Wk.reshape(P * C, P, G, d_hidden)
                     .transpose(0, 2, 1, 3)
                     .reshape(P * C, G * PH)).astype(bf16)             # (P*C, G*PH)
        b_base = jnp.concatenate([b_in.astype(f32).reshape(1, d_hidden),
                                  bz.astype(f32).reshape(n_blocks, d_hidden)], axis=0)
        b_fused = jnp.tile(b_base[:, None, :], (1, P, 1)).reshape(1, G * PH)

        row_args = [inp]
        row_specs = [pl.BlockSpec((1, TMP, P * C), lambda b, n: (b, n, 0))]
        weight_args = [w_fused, b_fused, w0_p, b0_p, w1_p, b1_p, w_out_p, b_out_p]
    else:
        enc = _pack_rows(pts.astype(bf16))
        # Hoist the loop-invariant per-example z = lin_z[k](features) into a tiny table,
        # replicated across the P lane groups (same z for every point of the example).
        z_base = jnp.einsum("bd,kdh->bkh", features.astype(f32), wz.astype(f32),
                            precision=jax.lax.Precision.HIGHEST) + jnp.squeeze(bz, 1).astype(f32)
        z_table = jnp.tile(z_base, (1, 1, P))                          # (B, n_blocks, PH)
        w_in_p = _block_diag(w_in.astype(f32), P).astype(bf16)         # (P*n_enc, PH)
        b_in_p = jnp.tile(b_in.astype(f32), (1, P))

        row_args = [enc, z_table]
        row_specs = [pl.BlockSpec((1, TMP, P * n_enc), lambda b, n: (b, n, 0)),
                     pl.BlockSpec((1, n_blocks, PH), lambda b, n: (b, 0, 0))]
        weight_args = [w_in_p, b_in_p, w0_p, b0_p, w1_p, b1_p, w_out_p, b_out_p]

    kernel = functools.partial(_resnet_fc_kernel, n_blocks=n_blocks,
                               activation=activation, per_point=per_point, ph=PH)

    out_p, penult_p = pl.pallas_call(
        kernel,
        out_shape=(
            jax.ShapeDtypeStruct((B, Np_pad, P * d_out), out_dtype),
            jax.ShapeDtypeStruct((B, Np_pad, PH), out_dtype),
        ),
        grid_spec=pltpu.PrefetchScalarGridSpec(
            num_scalar_prefetch=0,
            grid=grid,
            in_specs=row_specs + [_full_spec(a) for a in weight_args],
            out_specs=[
                pl.BlockSpec((1, TMP, P * d_out), lambda b, n: (b, n, 0)),
                pl.BlockSpec((1, TMP, PH), lambda b, n: (b, n, 0)),
            ],
        ),
        compiler_params=pltpu.CompilerParams(
            dimension_semantics=("parallel", "parallel")),
    )(*row_args, *weight_args)

    # Free row-major un-packing reshapes + trim the <=508-point padding.
    output = out_p.reshape(B, N_pad, d_out)[:, :N, :]
    penult = penult_p.reshape(B, N_pad, d_hidden)[:, :N, :]
    if no_batch:
        output, penult = output[0], penult[0]
    return output, penult


# ----------------------------- pure-JAX f32 reference -----------------------------
def resnet_fc_reference(points, features, params, *,
                        d_in=4, d_hidden=32, d_out=16, d_latent=16,
                        n_blocks=3, pos_encoding_freqs=0, activation="relu"):
    def act(v):
        return jnp.maximum(v, 0.0) if activation == "relu" else v * jax.nn.sigmoid(v)

    w_in, b_in, wz, bz, w0, b0, w1, b1, w_out, b_out = params
    if pos_encoding_freqs > 0:
        points = positional_encode(points, 0.1, pos_encoding_freqs)

    with jax.default_matmul_precision("float32"):
        x = points @ w_in + b_in[0]
        for blk in range(n_blocks):
            z = features @ wz[blk] + bz[blk, 0]
            if z.ndim == 2 and x.ndim == 3:
                z = z[:, None, :]
            x = x + z
            net = act(x) @ w0[blk] + b0[blk, 0]
            dx = act(net) @ w1[blk] + b1[blk, 0]
            x = x + dx
        penult = x
        output = act(x) @ w_out + b_out[0]
    return output, penult


# ----------------------------- deterministic parameter init -----------------------------
def init_params(key, *, actual_d_in, d_hidden, d_out, d_latent, n_blocks):
    ks = jax.random.split(key, 10)
    scale = 0.1
    w_in = scale * jax.random.normal(ks[0], (actual_d_in, d_hidden), jnp.float32)
    b_in = scale * jax.random.normal(ks[1], (1, d_hidden), jnp.float32)
    wz = scale * jax.random.normal(ks[2], (n_blocks, d_latent, d_hidden), jnp.float32)
    bz = scale * jax.random.normal(ks[3], (n_blocks, 1, d_hidden), jnp.float32)
    w0 = scale * jax.random.normal(ks[4], (n_blocks, d_hidden, d_hidden), jnp.float32)
    b0 = scale * jax.random.normal(ks[5], (n_blocks, 1, d_hidden), jnp.float32)
    w1 = scale * jax.random.normal(ks[6], (n_blocks, d_hidden, d_hidden), jnp.float32)
    b1 = scale * jax.random.normal(ks[7], (n_blocks, 1, d_hidden), jnp.float32)
    w_out = scale * jax.random.normal(ks[8], (d_hidden, d_out), jnp.float32)
    b_out = scale * jax.random.normal(ks[9], (1, d_out), jnp.float32)
    return (w_in, b_in, wz, bz, w0, b0, w1, b1, w_out, b_out)


if __name__ == "__main__":
    # small config consistent with ResnetFC defaults (scaled down)
    B, N = 2, 64
    d_in, d_hidden, d_out, d_latent = 4, 32, 16, 16
    n_blocks = 3
    pos_encoding_freqs = 2          # exercises the Fourier encoding path
    activation = "relu"
    actual_d_in = d_in * (pos_encoding_freqs * 2 + 1)

    key = jax.random.PRNGKey(0)
    k_pts, k_feat, k_feat3, k_par = jax.random.split(key, 4)
    points = jax.random.normal(k_pts, (B, N, d_in), jnp.float32)
    features = jax.random.normal(k_feat, (B, d_latent), jnp.float32)          # global (B, D) code
    features_pp = jax.random.normal(k_feat3, (B, N, d_latent), jnp.float32)   # per-point (B, N, D)
    params = init_params(k_par, actual_d_in=actual_d_in, d_hidden=d_hidden,
                         d_out=d_out, d_latent=d_latent, n_blocks=n_blocks)

    cfg = dict(d_in=d_in, d_hidden=d_hidden, d_out=d_out, d_latent=d_latent,
               n_blocks=n_blocks, pos_encoding_freqs=pos_encoding_freqs,
               activation=activation)

    # bf16 matmul operands (f32 accumulation) => compare against the f32 reference
    # with a correspondingly relaxed tolerance.
    TOL = 4e-2

    # --- path 1: global per-example features (B, D) ---
    out, penult = resnet_fc_forward(points, features, params, **cfg)
    out = jax.block_until_ready(out)
    penult = jax.block_until_ready(penult)
    ref_out, ref_penult = resnet_fc_reference(points, features, params, **cfg)
    assert out.shape == (B, N, d_out)
    assert penult.shape == (B, N, d_hidden)
    np.testing.assert_allclose(np.asarray(out), np.asarray(ref_out), rtol=TOL, atol=TOL)
    np.testing.assert_allclose(np.asarray(penult), np.asarray(ref_penult), rtol=TOL, atol=TOL)

    # --- path 2: per-point features (B, N, D) ---
    out2, penult2 = resnet_fc_forward(points, features_pp, params, **cfg)
    out2 = jax.block_until_ready(out2)
    penult2 = jax.block_until_ready(penult2)
    ref_out2, ref_penult2 = resnet_fc_reference(points, features_pp, params, **cfg)
    assert out2.shape == (B, N, d_out)
    assert penult2.shape == (B, N, d_hidden)
    np.testing.assert_allclose(np.asarray(out2), np.asarray(ref_out2), rtol=TOL, atol=TOL)
    np.testing.assert_allclose(np.asarray(penult2), np.asarray(ref_penult2), rtol=TOL, atol=TOL)

    print("KERNEL_OK")
</pallas_src>

<mosaic_0001>
module attributes {stable_mosaic.version = 11 : i64} {
  func.func @_resnet_fc_kernel(%arg0: i32, %arg1: i32, %arg2: memref<1x128x80xbf16, #tpu.memory_space<vmem>>, %arg3: memref<1x3x128xf32, #tpu.memory_space<vmem>>, %arg4: memref<80x128xbf16, #tpu.memory_space<vmem>>, %arg5: memref<1x128xf32, #tpu.memory_space<vmem>>, %arg6: memref<3x128x128xbf16, #tpu.memory_space<vmem>>, %arg7: memref<3x1x128xf32, #tpu.memory_space<vmem>>, %arg8: memref<3x128x128xbf16, #tpu.memory_space<vmem>>, %arg9: memref<3x1x128xf32, #tpu.memory_space<vmem>>, %arg10: memref<128x64xbf16, #tpu.memory_space<vmem>>, %arg11: memref<1x64xf32, #tpu.memory_space<vmem>>, %arg12: memref<1x128x64xf32, #tpu.memory_space<vmem>>, %arg13: memref<1x128x128xf32, #tpu.memory_space<vmem>>) attributes {dimension_semantics = [#tpu.dimension_semantics<parallel>, #tpu.dimension_semantics<parallel>], iteration_bounds = array<i64: 2, 1>, scalar_prefetch = 0 : i64, scratch_operands = 0 : i64, tpu.core_type = #tpu.core_type<tc>, window_params = [{transform_indices = @transform_0, window_bounds = array<i64: 1, 128, 80>}, {transform_indices = @transform_1, window_bounds = array<i64: 1, 3, 128>}, {pipeline_mode = #tpu.pipeline_mode<synchronous>, transform_indices = @transform_2, window_bounds = array<i64: 80, 128>}, {pipeline_mode = #tpu.pipeline_mode<synchronous>, transform_indices = @transform_3, window_bounds = array<i64: 1, 128>}, {pipeline_mode = #tpu.pipeline_mode<synchronous>, transform_indices = @transform_4, window_bounds = array<i64: 3, 128, 128>}, {pipeline_mode = #tpu.pipeline_mode<synchronous>, transform_indices = @transform_5, window_bounds = array<i64: 3, 1, 128>}, {pipeline_mode = #tpu.pipeline_mode<synchronous>, transform_indices = @transform_6, window_bounds = array<i64: 3, 128, 128>}, {pipeline_mode = #tpu.pipeline_mode<synchronous>, transform_indices = @transform_7, window_bounds = array<i64: 3, 1, 128>}, {pipeline_mode = #tpu.pipeline_mode<synchronous>, transform_indices = @transform_8, window_bounds = array<i64: 128, 64>}, {pipeline_mode = #tpu.pipeline_mode<synchronous>, transform_indices = @transform_9, window_bounds = array<i64: 1, 64>}, {transform_indices = @transform_10, window_bounds = array<i64: 1, 128, 64>}, {transform_indices = @transform_11, window_bounds = array<i64: 1, 128, 128>}]} {
    %c0 = arith.constant 0 : index
    %c0_0 = arith.constant 0 : index
    %c0_1 = arith.constant 0 : index
    %0 = vector.load %arg2[%c0, %c0_0, %c0_1] : memref<1x128x80xbf16, #tpu.memory_space<vmem>>, vector<1x128x80xbf16>
    %1 = vector.shape_cast %0 : vector<1x128x80xbf16> to vector<128x80xbf16>
    %c0_2 = arith.constant 0 : index
    %c0_3 = arith.constant 0 : index
    %2 = vector.load %arg4[%c0_2, %c0_3] : memref<80x128xbf16, #tpu.memory_space<vmem>>, vector<80x128xbf16>
    %cst = arith.constant dense<0.000000e+00> : vector<128x128xf32>
    %3 = tpu.matmul %1, %2, %cst {dimension_numbers = #tpu.dot_dimension_numbers<[1], [0], [0], [1], [0, 0, 1, 1], [], []>} : vector<128x80xbf16>, vector<80x128xbf16>, vector<128x128xf32> -> vector<128x128xf32>
    %c0_4 = arith.constant 0 : index
    %c0_5 = arith.constant 0 : index
    %4 = vector.load %arg5[%c0_4, %c0_5] : memref<1x128xf32, #tpu.memory_space<vmem>>, vector<1x128xf32>
    %5 = vector.broadcast %4 : vector<1x128xf32> to vector<128x128xf32>
    %6 = arith.addf %3, %5 : vector<128x128xf32>
    %c0_6 = arith.constant 0 : index
    %c0_7 = arith.constant 0 : index
    %c0_8 = arith.constant 0 : index
    %7 = vector.load %arg3[%c0_6, %c0_7, %c0_8] : memref<1x3x128xf32, #tpu.memory_space<vmem>>, vector<1x1x128xf32>
    %8 = vector.shape_cast %7 : vector<1x1x128xf32> to vector<1x128xf32>
    %9 = vector.broadcast %8 : vector<1x128xf32> to vector<128x128xf32>
    %10 = arith.addf %6, %9 : vector<128x128xf32>
    %cst_9 = arith.constant 0.000000e+00 : f32
    %11 = vector.broadcast %cst_9 : f32 to vector<128x128xf32>
    %12 = arith.maximumf %10, %11 : vector<128x128xf32>
    %13 = arith.truncf %12 : vector<128x128xf32> to vector<128x128xbf16>
    %c0_10 = arith.constant 0 : index
    %c0_11 = arith.constant 0 : index
    %c0_12 = arith.constant 0 : index
    %14 = vector.load %arg6[%c0_10, %c0_11, %c0_12] : memref<3x128x128xbf16, #tpu.memory_space<vmem>>, vector<1x128x128xbf16>
    %15 = vector.shape_cast %14 : vector<1x128x128xbf16> to vector<128x128xbf16>
    %cst_13 = arith.constant dense<0.000000e+00> : vector<128x128xf32>
    %16 = tpu.matmul %13, %15, %cst_13 {dimension_numbers = #tpu.dot_dimension_numbers<[1], [0], [0], [1], [0, 0, 1, 1], [], []>} : vector<128x128xbf16>, vector<128x128xbf16>, vector<128x128xf32> -> vector<128x128xf32>
    %c0_14 = arith.constant 0 : index
    %c0_15 = arith.constant 0 : index
    %c0_16 = arith.constant 0 : index
    %17 = vector.load %arg7[%c0_14, %c0_15, %c0_16] : memref<3x1x128xf32, #tpu.memory_space<vmem>>, vector<1x1x128xf32>
    %18 = vector.shape_cast %17 : vector<1x1x128xf32> to vector<1x128xf32>
    %19 = vector.broadcast %18 : vector<1x128xf32> to vector<128x128xf32>
    %20 = arith.addf %16, %19 : vector<128x128xf32>
    %cst_17 = arith.constant 0.000000e+00 : f32
    %21 = vector.broadcast %cst_17 : f32 to vector<128x128xf32>
    %22 = arith.maximumf %20, %21 : vector<128x128xf32>
    %23 = arith.truncf %22 : vector<128x128xf32> to vector<128x128xbf16>
    %c0_18 = arith.constant 0 : index
    %c0_19 = arith.constant 0 : index
    %c0_20 = arith.constant 0 : index
    %24 = vector.load %arg8[%c0_18, %c0_19, %c0_20] : memref<3x128x128xbf16, #tpu.memory_space<vmem>>, vector<1x128x128xbf16>
    %25 = vector.shape_cast %24 : vector<1x128x128xbf16> to vector<128x128xbf16>
    %cst_21 = arith.constant dense<0.000000e+00> : vector<128x128xf32>
    %26 = tpu.matmul %23, %25, %cst_21 {dimension_numbers = #tpu.dot_dimension_numbers<[1], [0], [0], [1], [0, 0, 1, 1], [], []>} : vector<128x128xbf16>, vector<128x128xbf16>, vector<128x128xf32> -> vector<128x128xf32>
    %c0_22 = arith.constant 0 : index
    %c0_23 = arith.constant 0 : index
    %c0_24 = arith.constant 0 : index
    %27 = vector.load %arg9[%c0_22, %c0_23, %c0_24] : memref<3x1x128xf32, #tpu.memory_space<vmem>>, vector<1x1x128xf32>
    %28 = vector.shape_cast %27 : vector<1x1x128xf32> to vector<1x128xf32>
    %29 = vector.broadcast %28 : vector<1x128xf32> to vector<128x128xf32>
    %30 = arith.addf %26, %29 : vector<128x128xf32>
    %31 = arith.addf %10, %30 : vector<128x128xf32>
    %c0_25 = arith.constant 0 : index
    %c1 = arith.constant 1 : index
    %c0_26 = arith.constant 0 : index
    %32 = vector.load %arg3[%c0_25, %c1, %c0_26] : memref<1x3x128xf32, #tpu.memory_space<vmem>>, vector<1x1x128xf32>
    %33 = vector.shape_cast %32 : vector<1x1x128xf32> to vector<1x128xf32>
    %34 = vector.broadcast %33 : vector<1x128xf32> to vector<128x128xf32>
    %35 = arith.addf %31, %34 : vector<128x128xf32>
    %cst_27 = arith.constant 0.000000e+00 : f32
    %36 = vector.broadcast %cst_27 : f32 to vector<128x128xf32>
    %37 = arith.maximumf %35, %36 : vector<128x128xf32>
    %38 = arith.truncf %37 : vector<128x128xf32> to vector<128x128xbf16>
    %c1_28 = arith.constant 1 : index
    %c0_29 = arith.constant 0 : index
    %c0_30 = arith.constant 0 : index
    %39 = vector.load %arg6[%c1_28, %c0_29, %c0_30] : memref<3x128x128xbf16, #tpu.memory_space<vmem>>, vector<1x128x128xbf16>
    %40 = vector.shape_cast %39 : vector<1x128x128xbf16> to vector<128x128xbf16>
    %cst_31 = arith.constant dense<0.000000e+00> : vector<128x128xf32>
    %41 = tpu.matmul %38, %40, %cst_31 {dimension_numbers = #tpu.dot_dimension_numbers<[1], [0], [0], [1], [0, 0, 1, 1], [], []>} : vector<128x128xbf16>, vector<128x128xbf16>, vector<128x128xf32> -> vector<128x128xf32>
    %c1_32 = arith.constant 1 : index
    %c0_33 = arith.constant 0 : index
    %c0_34 = arith.constant 0 : index
    %42 = vector.load %arg7[%c1_32, %c0_33, %c0_34] : memref<3x1x128xf32, #tpu.memory_space<vmem>>, vector<1x1x128xf32>
    %43 = vector.shape_cast %42 : vector<1x1x128xf32> to vector<1x128xf32>
    %44 = vector.broadcast %43 : vector<1x128xf32> to vector<128x128xf32>
    %45 = arith.addf %41, %44 : vector<128x128xf32>
    %cst_35 = arith.constant 0.000000e+00 : f32
    %46 = vector.broadcast %cst_35 : f32 to vector<128x128xf32>
    %47 = arith.maximumf %45, %46 : vector<128x128xf32>
    %48 = arith.truncf %47 : vector<128x128xf32> to vector<128x128xbf16>
    %c1_36 = arith.constant 1 : index
    %c0_37 = arith.constant 0 : index
    %c0_38 = arith.constant 0 : index
    %49 = vector.load %arg8[%c1_36, %c0_37, %c0_38] : memref<3x128x128xbf16, #tpu.memory_space<vmem>>, vector<1x128x128xbf16>
    %50 = vector.shape_cast %49 : vector<1x128x128xbf16> to vector<128x128xbf16>
    %cst_39 = arith.constant dense<0.000000e+00> : vector<128x128xf32>
    %51 = tpu.matmul %48, %50, %cst_39 {dimension_numbers = #tpu.dot_dimension_numbers<[1], [0], [0], [1], [0, 0, 1, 1], [], []>} : vector<128x128xbf16>, vector<128x128xbf16>, vector<128x128xf32> -> vector<128x128xf32>
    %c1_40 = arith.constant 1 : index
    %c0_41 = arith.constant 0 : index
    %c0_42 = arith.constant 0 : index
    %52 = vector.load %arg9[%c1_40, %c0_41, %c0_42] : memref<3x1x128xf32, #tpu.memory_space<vmem>>, vector<1x1x128xf32>
    %53 = vector.shape_cast %52 : vector<1x1x128xf32> to vector<1x128xf32>
    %54 = vector.broadcast %53 : vector<1x128xf32> to vector<128x128xf32>
    %55 = arith.addf %51, %54 : vector<128x128xf32>
    %56 = arith.addf %35, %55 : vector<128x128xf32>
    %c0_43 = arith.constant 0 : index
    %c2 = arith.constant 2 : index
    %c0_44 = arith.constant 0 : index
    %57 = vector.load %arg3[%c0_43, %c2, %c0_44] : memref<1x3x128xf32, #tpu.memory_space<vmem>>, vector<1x1x128xf32>
    %58 = vector.shape_cast %57 : vector<1x1x128xf32> to vector<1x128xf32>
    %59 = vector.broadcast %58 : vector<1x128xf32> to vector<128x128xf32>
    %60 = arith.addf %56, %59 : vector<128x128xf32>
    %cst_45 = arith.constant 0.000000e+00 : f32
    %61 = vector.broadcast %cst_45 : f32 to vector<128x128xf32>
    %62 = arith.maximumf %60, %61 : vector<128x128xf32>
    %63 = arith.truncf %62 : vector<128x128xf32> to vector<128x128xbf16>
    %c2_46 = arith.constant 2 : index
    %c0_47 = arith.constant 0 : index
    %c0_48 = arith.constant 0 : index
    %64 = vector.load %arg6[%c2_46, %c0_47, %c0_48] : memref<3x128x128xbf16, #tpu.memory_space<vmem>>, vector<1x128x128xbf16>
    %65 = vector.shape_cast %64 : vector<1x128x128xbf16> to vector<128x128xbf16>
    %cst_49 = arith.constant dense<0.000000e+00> : vector<128x128xf32>
    %66 = tpu.matmul %63, %65, %cst_49 {dimension_numbers = #tpu.dot_dimension_numbers<[1], [0], [0], [1], [0, 0, 1, 1], [], []>} : vector<128x128xbf16>, vector<128x128xbf16>, vector<128x128xf32> -> vector<128x128xf32>
    %c2_50 = arith.constant 2 : index
    %c0_51 = arith.constant 0 : index
    %c0_52 = arith.constant 0 : index
    %67 = vector.load %arg7[%c2_50, %c0_51, %c0_52] : memref<3x1x128xf32, #tpu.memory_space<vmem>>, vector<1x1x128xf32>
    %68 = vector.shape_cast %67 : vector<1x1x128xf32> to vector<1x128xf32>
    %69 = vector.broadcast %68 : vector<1x128xf32> to vector<128x128xf32>
    %70 = arith.addf %66, %69 : vector<128x128xf32>
    %cst_53 = arith.constant 0.000000e+00 : f32
    %71 = vector.broadcast %cst_53 : f32 to vector<128x128xf32>
    %72 = arith.maximumf %70, %71 : vector<128x128xf32>
    %73 = arith.truncf %72 : vector<128x128xf32> to vector<128x128xbf16>
    %c2_54 = arith.constant 2 : index
    %c0_55 = arith.constant 0 : index
    %c0_56 = arith.constant 0 : index
    %74 = vector.load %arg8[%c2_54, %c0_55, %c0_56] : memref<3x128x128xbf16, #tpu.memory_space<vmem>>, vector<1x128x128xbf16>
    %75 = vector.shape_cast %74 : vector<1x128x128xbf16> to vector<128x128xbf16>
    %cst_57 = arith.constant dense<0.000000e+00> : vector<128x128xf32>
    %76 = tpu.matmul %73, %75, %cst_57 {dimension_numbers = #tpu.dot_dimension_numbers<[1], [0], [0], [1], [0, 0, 1, 1], [], []>} : vector<128x128xbf16>, vector<128x128xbf16>, vector<128x128xf32> -> vector<128x128xf32>
    %c2_58 = arith.constant 2 : index
    %c0_59 = arith.constant 0 : index
    %c0_60 = arith.constant 0 : index
    %77 = vector.load %arg9[%c2_58, %c0_59, %c0_60] : memref<3x1x128xf32, #tpu.memory_space<vmem>>, vector<1x1x128xf32>
    %78 = vector.shape_cast %77 : vector<1x1x128xf32> to vector<1x128xf32>
    %79 = vector.broadcast %78 : vector<1x128xf32> to vector<128x128xf32>
    %80 = arith.addf %76, %79 : vector<128x128xf32>
    %81 = arith.addf %60, %80 : vector<128x128xf32>
    %c0_61 = arith.constant 0 : index
    %c0_62 = arith.constant 0 : index
    %c0_63 = arith.constant 0 : index
    %82 = vector.load %arg13[%c0_61, %c0_62, %c0_63] : memref<1x128x128xf32, #tpu.memory_space<vmem>>, vector<1x128x128xf32>
    %83 = vector.shape_cast %82 : vector<1x128x128xf32> to vector<128x128xf32>
    %84 = vector.shape_cast %81 : vector<128x128xf32> to vector<1x128x128xf32>
    tpu.vector_store %arg13[%c0_61, %c0_62, %c0_63], %84 {strides = array<i32>} : memref<1x128x128xf32, #tpu.memory_space<vmem>>, vector<1x128x128xf32>,
    %cst_64 = arith.constant 0.000000e+00 : f32
    %85 = vector.broadcast %cst_64 : f32 to vector<128x128xf32>
    %86 = arith.maximumf %81, %85 : vector<128x128xf32>
    %87 = arith.truncf %86 : vector<128x128xf32> to vector<128x128xbf16>
    %c0_65 = arith.constant 0 : index
    %c0_66 = arith.constant 0 : index
    %88 = vector.load %arg10[%c0_65, %c0_66] : memref<128x64xbf16, #tpu.memory_space<vmem>>, vector<128x64xbf16>
    %cst_67 = arith.constant dense<0.000000e+00> : vector<128x64xf32>
    %89 = tpu.matmul %87, %88, %cst_67 {dimension_numbers = #tpu.dot_dimension_numbers<[1], [0], [0], [1], [0, 0, 1, 1], [], []>} : vector<128x128xbf16>, vector<128x64xbf16>, vector<128x64xf32> -> vector<128x64xf32>
    %c0_68 = arith.constant 0 : index
    %c0_69 = arith.constant 0 : index
    %90 = vector.load %arg11[%c0_68, %c0_69] : memref<1x64xf32, #tpu.memory_space<vmem>>, vector<1x64xf32>
    %91 = vector.broadcast %90 : vector<1x64xf32> to vector<128x64xf32>
    %92 = arith.addf %89, %91 : vector<128x64xf32>
    %c0_70 = arith.constant 0 : index
    %c0_71 = arith.constant 0 : index
    %c0_72 = arith.constant 0 : index
    %93 = vector.load %arg12[%c0_70, %c0_71, %c0_72] : memref<1x128x64xf32, #tpu.memory_space<vmem>>, vector<1x128x64xf32>
    %94 = vector.shape_cast %93 : vector<1x128x64xf32> to vector<128x64xf32>
    %95 = vector.shape_cast %92 : vector<128x64xf32> to vector<1x128x64xf32>
    tpu.vector_store %arg12[%c0_70, %c0_71, %c0_72], %95 {strides = array<i32>} : memref<1x128x64xf32, #tpu.memory_space<vmem>>, vector<1x128x64xf32>,
    return
  }
  func.func @transform_0(%arg0: i32, %arg1: i32) -> (i32, i32, i32) {
    %c0_i32 = arith.constant 0 : i32
    %c0_i32_0 = arith.constant 0 : i32
    return %arg0, %arg1, %c0_i32 : i32, i32, i32
  }
  func.func @transform_1(%arg0: i32, %arg1: i32) -> (i32, i32, i32) {
    %c0_i32 = arith.constant 0 : i32
    %c0_i32_0 = arith.constant 0 : i32
    %c0_i32_1 = arith.constant 0 : i32
    return %arg0, %c0_i32, %c0_i32_0 : i32, i32, i32
  }
  func.func @transform_2(%arg0: i32, %arg1: i32) -> (i32, i32) {
    %c0_i32 = arith.constant 0 : i32
    %c0_i32_0 = arith.constant 0 : i32
    %c0_i32_1 = arith.constant 0 : i32
    return %c0_i32, %c0_i32_0 : i32, i32
  }
  func.func @transform_3(%arg0: i32, %arg1: i32) -> (i32, i32) {
    %c0_i32 = arith.constant 0 : i32
    %c0_i32_0 = arith.constant 0 : i32
    %c0_i32_1 = arith.constant 0 : i32
    return %c0_i32, %c0_i32_0 : i32, i32
  }
  func.func @transform_4(%arg0: i32, %arg1: i32) -> (i32, i32, i32) {
    %c0_i32 = arith.constant 0 : i32
    %c0_i32_0 = arith.constant 0 : i32
    %c0_i32_1 = arith.constant 0 : i32
    %c0_i32_2 = arith.constant 0 : i32
    return %c0_i32, %c0_i32_0, %c0_i32_1 : i32, i32, i32
  }
  func.func @transform_5(%arg0: i32, %arg1: i32) -> (i32, i32, i32) {
    %c0_i32 = arith.constant 0 : i32
    %c0_i32_0 = arith.constant 0 : i32
    %c0_i32_1 = arith.constant 0 : i32
    %c0_i32_2 = arith.constant 0 : i32
    return %c0_i32, %c0_i32_0, %c0_i32_1 : i32, i32, i32
  }
  func.func @transform_6(%arg0: i32, %arg1: i32) -> (i32, i32, i32) {
    %c0_i32 = arith.constant 0 : i32
    %c0_i32_0 = arith.constant 0 : i32
    %c0_i32_1 = arith.constant 0 : i32
    %c0_i32_2 = arith.constant 0 : i32
    return %c0_i32, %c0_i32_0, %c0_i32_1 : i32, i32, i32
  }
  func.func @transform_7(%arg0: i32, %arg1: i32) -> (i32, i32, i32) {
    %c0_i32 = arith.constant 0 : i32
    %c0_i32_0 = arith.constant 0 : i32
    %c0_i32_1 = arith.constant 0 : i32
    %c0_i32_2 = arith.constant 0 : i32
    return %c0_i32, %c0_i32_0, %c0_i32_1 : i32, i32, i32
  }
  func.func @transform_8(%arg0: i32, %arg1: i32) -> (i32, i32) {
    %c0_i32 = arith.constant 0 : i32
    %c0_i32_0 = arith.constant 0 : i32
    %c0_i32_1 = arith.constant 0 : i32
    return %c0_i32, %c0_i32_0 : i32, i32
  }
  func.func @transform_9(%arg0: i32, %arg1: i32) -> (i32, i32) {
    %c0_i32 = arith.constant 0 : i32
    %c0_i32_0 = arith.constant 0 : i32
    %c0_i32_1 = arith.constant 0 : i32
    return %c0_i32, %c0_i32_0 : i32, i32
  }
  func.func @transform_10(%arg0: i32, %arg1: i32) -> (i32, i32, i32) {
    %c0_i32 = arith.constant 0 : i32
    %c0_i32_0 = arith.constant 0 : i32
    return %arg0, %arg1, %c0_i32 : i32, i32, i32
  }
  func.func @transform_11(%arg0: i32, %arg1: i32) -> (i32, i32, i32) {
    %c0_i32 = arith.constant 0 : i32
    %c0_i32_0 = arith.constant 0 : i32
    return %arg0, %arg1, %c0_i32 : i32, i32, i32
  }
}

</mosaic_0001>

<bundles_post_ra>
// kernel: tpu_custom_call.1
= control target key start
LH: loop header
LB: loop body
LE: loop exit
PB: predicated region body
PF: predicated region fallthrough
CT: control target
= control target key end

     0   :  { %s3412_s0 = inlined_call_operand.vmem [shape: bf16[2,128,80], index: 0, kind: input, shape index: {}]   ;;  %s3413_s1 = inlined_call_operand.vmem [shape: f32[2,3,128], index: 1, kind: input, shape index: {}]   ;;  %s3414_s2 = inlined_call_operand.vmem [shape: bf16[80,128], index: 2, kind: input, shape index: {}]   ;;  %s3415_s3 = inlined_call_operand.hbm [shape: f32[1,128], index: 3, kind: input, shape index: {}]   ;;  %s3416_s4 = inlined_call_operand.vmem [shape: bf16[3,128,128], index: 4, kind: input, shape index: {}]   ;;  %s3417_s5 = inlined_call_operand.vmem [shape: f32[3,1,128], index: 5, kind: input, shape index: {}]   ;;  %s3418_s6 = inlined_call_operand.hbm [shape: bf16[3,128,128], index: 6, kind: input, shape index: {}]   ;;  %s3419_s7 = inlined_call_operand.vmem [shape: f32[3,1,128], index: 7, kind: input, shape index: {}]   ;;  %s3420_s8 = inlined_call_operand.vmem [shape: bf16[128,64], index: 8, kind: input, shape index: {}]   ;;  %s3421_s9 = inlined_call_operand.vmem [shape: f32[1,64], index: 9, kind: input, shape index: {}]   ;;  %s3422_s10 = inlined_call_operand.vmem [shape: f32[2,128,64], index: 10, kind: output, shape index: {0}]   ;;  %s3423_s11 = inlined_call_operand.hbm [shape: f32[2,128,128], index: 11, kind: output, shape index: {1}]  }
   0x1   :  { %3426 = sst [smem:[#allocation14_spill]] %s3412_s0 }
   0x2   :  { %3427 = sst [smem:[#allocation15_spill]] %s3413_s1 }
   0x3   :  { %3428 = sst [smem:[#allocation16_spill]] %s3415_s3 }
   0x4   :  { %17 = vsyncpa [#allocation3], 0 }
   0x5   :  { %18 = vsyncpa [#allocation6], 0 }
   0x6   :  { %19 = vsyncpa [#allocation4], 0 }
   0x7   :  { %21 = vsyncpa [#allocation4 + $0x1], 0  ;;  %s2692_s17 = smov 0   ;;  %s2694_s18 = smov 0  }
   0x8   :  { %s2696_s19 = smov 0   ;;  %s2698_s20 = smov 0  }
   0x9   :  { %s2700_s21 = smov 0   ;;  %s2702_s22 = smov 0  }
   0xa LB: > { %3429 = sst [smem:[#allocation11_spill]] %s2620_s21  ;;  %s1975_s23 = sadd.s32 4294967295, %s2624_s22   ;;  %s2624_s22 = sphi %s2702_s22, %s27_s22   ;;  %s2620_s21 = sphi %s2700_s21, %s3441_s21   ;;  %s2616_s20 = sphi %s2698_s20, %s3440_s20   ;;  %s2612_s19 = sphi %s2696_s19, %s3444_s19   ;;  %s2608_s18 = sphi %s2694_s18, %s3443_s18   ;;  %s2604_s17 = sphi %s2692_s17, %s3442_s17  }
   0xb   : > { %s1976_s24 = sadd.s32 4294967294, %s2624_s22   ;;  %s39_s25 = sadd.s32 1, %s2620_s21 }
   0xc   : > { %s298_s26 = sadd.s32 1, %s2612_s19  ;;  %p41_p0 = scmp.ge.s32.totalorder %s39_s25, 2 }
   0xd   : > { %p308_p1 = scmp.ne.s32.totalorder %s2612_s19, %s2608_s18  ;;  %p309_p2 = scmp.eq.s32.totalorder %s1975_s23, 1 }
   0xe   : > { %p314_p3 = scmp.ne.s32.totalorder %s2608_s18, %s2604_s17  ;;  %s3446_s25 = smov (%p41_p0, %s39_s25), 0 }
   0xf   : > { %3430 = sst [smem:[#allocation12_spill]] %s3446_s25  ;;  %p2732_p4 = por %p309_p2, %p308_p1 }
  0x10   : > { %p315_p5 = scmp.eq.s32.totalorder %s1976_s24, 1  ;;  %s293_s28 = ssub.s32 %s2620_s21, %s3446_s25 }
  0x11   : > { %p1977_p6 = scmp.ge.s32.totalorder %s2624_s22, 1  ;;  %p296_p7 = scmp.eq.s32.totalorder %s293_s28, 0 }
  0x12   : > { %p2739_p8 = por %p315_p5, %p314_p3  ;;  %p322_p9 = scmp.lt.s32.totalorder %s2624_s22, 3 }
  0x13   : > { %s2745_s30 = scalar_select %p296_p7, %s2612_s19, %s298_s26  }
  0x14   : > { %p2747_p10 = pnand %p1977_p6, %p322_p9  ;;  %p2751_p11 = scmp.eq.s32.totalorder %s1975_s23, 0 }
  0x15   : > { %3433 = sst [smem:[#allocation13_spill]] %s2745_s30  ;;  %s2626_s24 = smov [#allocation2]  }
  0x16   : > { %s3436_s3 = sld [smem:[#allocation16_spill]]  ;;  %p2397_p12 = pneg %p2747_p10 }
  0x17   : > { %s339_s26 = sshll.u32 %s2626_s24, 4  ;;  %s354_s21 = sshll.u32 %s3418_s6, 4  ;;  %s340_s26 = int_to_ptr.vmem [resolvable:$true] %s339_s26  ;;  %s355_s21 = int_to_ptr.hbm [resolvable:$true] %s354_s21 }
  0x18   : > { %p2398_p13 = pnand %p2751_p11, %p2397_p12  ;;  %s2627_s23 = smov [#allocation5]  }
  0x19   : > { %s356_s30 = sshll.u32 %s2627_s23, 4  ;;  %s2628_s14 = smov 64   ;;  %s357_s30 = int_to_ptr.vmem [resolvable:$true] %s356_s30 }
  0x1a   : > { %s2629_s15 = smov 4   ;;  %401 = sbr.rel (%p2747_p10) target bundleno = 1319 (0x527), region = 60 }
  0x1b   : > { %2403 = dma.hbm_to_vmem [thread:$0]  (!%p2398_p13), %s355_s21, 3072, %s357_s30, [#allocation6], %s2628_s14, %s2628_s14, %s2629_s15  }
  0x1c   : > { %s337_s16 = sshll.u32 %s3436_s3, 4  ;;  %s338_s16 = int_to_ptr.hbm [resolvable:$true] %s337_s16 }
  0x1d   : > { %2400 = dma.hbm_to_vmem [thread:$0]  (!%p2398_p13), %s338_s16, 16, %s340_s26, [#allocation3]  }
  0x1f   : > { %2591 = dma.done.wait (%p2751_p11), [#allocation3], 16  }
  0x20   : > { %2593 = vsyncadd (%p2751_p11), [#allocation3], 4294967280 }
  0x21   : > { %2595 = dma.done.wait (%p2751_p11), [#allocation6], 3072  }
  0x22   : > { %2597 = vsyncadd (%p2751_p11), [#allocation6], 4294964224  ;;  %p465_p0 = scmp.lt.s32.totalorder %s2616_s20, 1  ;;  %v2329_v0 = vld [vmem:[%s3414_s2 + $0x20] sm:$0xff]  ;;  %s3437_s1 = sld [smem:[#allocation15_spill]]  ;;  %v2328_v1 = vld [vmem:[%s3414_s2 + $0x18] sm:$0xff] }
  0x23   : > { %618 = vmatpush.bf16.msra.mxu0 %v2329_v0  ;;  %v2327_v2 = vld [vmem:[%s3414_s2 + $0x10] sm:$0xff]  ;;  %v2326_v3 = vld [vmem:[%s3414_s2 + $0x8] sm:$0xff]  ;;  %v2325_v4 = vld [vmem:[%s3414_s2] sm:$0xff]  ;;  %s3438_s0 = sld [smem:[#allocation14_spill]]  ;;  %vm590_vm0 = vcmask 654336   ;;  %s461_s12 = sand.u32 1, %s2608_s18  }
  0x24   : > { %s2777_s25 = scalar_select %p465_p0, %s2616_s20, 1  ;;  %v2337_v10 = vld [vmem:[%s3416_s4 + $0x38] sm:$0xff]  ;;  %v2336_v12 = vld [vmem:[%s3416_s4 + $0x30] sm:$0xff]  ;;  %v2335_v13 = vld [vmem:[%s3416_s4 + $0x28] sm:$0xff] }
  0x25   : > { %774 = vmatpush.bf16.msra.mxu1 %v2337_v10  ;;  %v2334_v14 = vld [vmem:[%s3416_s4 + $0x20] sm:$0xff]  ;;  %v2333_v16 = vld [vmem:[%s3416_s4 + $0x18] sm:$0xff]  ;;  %v2332_v17 = vld [vmem:[%s3416_s4 + $0x10] sm:$0xff]  ;;  %s1984_s24 = sshll.u32 %s461_s12, 7  ;;  %s2386_s28 = sshll.u32 %s2616_s20, 7 }
  0x26   : > { %s1987_s21 = sshll.u32 %s2777_s25, 2  ;;  %s2315_s30 = sshll.u32 %s2777_s25, 6  ;;  %v2331_v18 = vld [vmem:[%s3416_s4 + $0x8] sm:$0xff]  ;;  %v2330_v19 = vld [vmem:[%s3416_s4] sm:$0xff] }
  0x27   : > { %619 = vmatpush.bf16.msra.mxu0 %v2328_v1  ;;  %v2846_v22 = vld [vmem:[#allocation2] ss:$0 sm:$0xff]  ;;  %s3284_s3 = scalar_lea.vmem [#allocation7], %s1984_s24  ;;  %s1821_s14 = scalar_lea.hbm %s3423_s11, %s2386_s28 }
  0x28   : > { %s2786_s26 = scalar_lea.vmem %s3437_s1, %s1987_s21  ;;  %v2345_v10 = vld [vmem:[#allocation5 + $0x38] sm:$0xff]  ;;  %s1822_s15 = sshll.u32 %s3284_s3, 4  ;;  %s1823_s15 = int_to_ptr.vmem [resolvable:$true] %s1822_s15 }
  0x29   : > { %s2804_s13 = scalar_lea.vmem %s3438_s0, %s2315_s30  ;;  %775 = vmatpush.bf16.msra.mxu1 %v2336_v12  ;;  %v2849_v23 = vld [vmem:[%s2786_s26] ss:$0 sm:$0xff]  ;;  %915 = vmatpush.bf16.msra.mxu2 %v2345_v10  ;;  %s1824_s30 = sshll.u32 %s1821_s14, 4  ;;  %s1825_s30 = int_to_ptr.hbm [resolvable:$true] %s1824_s30 }
  0x2a   : > { %v2317_v5 = vld [vmem:[%s2804_s13] sm:$0xff]  ;;  %v2318_v6 = vld [vmem:[%s2804_s13 + $0x8] sm:$0xff]  ;;  %v2319_v7 = vld [vmem:[%s2804_s13 + $0x10] sm:$0xff]  ;;  %s2552_s21 = sshra.s32 %s1825_s30, 4  ;;  %s2558_s20 = scalar_lea.hbm %s3423_s11, 256  ;;  %s2553_s21 = int_to_ptr.hbm [resolvable:$true] %s2552_s21 }
  0x2b   : > { %620 = vmatpush.bf16.msra.mxu0 %v2327_v2  ;;  %v2320_v8 = vld [vmem:[%s2804_s13 + $0x18] sm:$0xff]  ;;  %v2321_v9 = vld [vmem:[%s2804_s13 + $0x20] sm:$0xff]  ;;  %v2322_v11 = vld [vmem:[%s2804_s13 + $0x28] sm:$0xff]  ;;  %s2554_s16 = scalar_lea.hbm %s2553_s21, 128  ;;  %p2559_p5 = scmp.lt.s32.totalorder %s2553_s21, %s3423_s11 }
  0x2c   : > { %v2323_v15 = vld [vmem:[%s2804_s13 + $0x30] sm:$0xff]  ;;  %v2324_v20 = vld [vmem:[%s2804_s13 + $0x38] sm:$0xff]  ;;  %s1804_s13 = scalar_lea.sflag [#allocation4], %s461_s12  ;;  %p2555_p1 = scmp.ne.s32.totalorder %s2553_s21, %s2554_s16 }
  0x2d   : > { %776 = vmatpush.bf16.msra.mxu1 %v2335_v13  ;;  %p2560_p6 = scmp.lt.s32.totalorder %s2558_s20, %s2554_s16 }
  0x2e   : > { %p2556_p2 = pnand %p2555_p1, %p2732_p4 }
  0x2f   : > { %621 = vmatpush.bf16.msra.mxu0 %v2326_v3  ;;  %p2561_p7 = por %p2560_p6, %p2559_p5 }
  0x30   : > { %p2557_p3 = pneg %p2556_p2 }
  0x31   : > { %777 = vmatpush.bf16.msra.mxu1 %v2334_v14 }
  0x32   : > { %p2562_p9 = pnand %p2561_p7, %p2557_p3 }
  0x33   : > { %622 = vmatpush.bf16.msra.mxu0 %v2325_v4 }
  0x35   : > { %778 = vmatpush.bf16.msra.mxu1 %v2333_v16  ;;  %v2343_v16 = vld [vmem:[#allocation5 + $0x28] sm:$0xff] }
  0x36   : > { %2042 = vmatmul.msk.bf16.vlgmr.msra.gmra.mxu0 %vm590_vm0, %v2317_v5 }
  0x39   : > { %779 = vmatpush.bf16.msra.mxu1 %v2332_v17 }
  0x3d   : > { %780 = vmatpush.bf16.msra.mxu1 %v2331_v18  ;;  %v2342_v18 = vld [vmem:[#allocation5 + $0x20] sm:$0xff] }
  0x41   : > { %781 = vmatpush.bf16.msra.mxu1 %v2330_v19 }
  0x46   : > { %2043 = vmatmul.msk.bf16.gmra.mxu0 %vm590_vm0, %v2318_v6 }
  0x56   : > { %2044 = vmatmul.msk.bf16.gmra.mxu0 %vm590_vm0, %v2319_v7 }
  0x66   : > { %2045 = vmatmul.msk.bf16.gmra.mxu0 %vm590_vm0, %v2320_v8 }
  0x76   : > { %2046 = vmatmul.msk.bf16.gmra.mxu0 %vm590_vm0, %v2321_v9 }
  0x86   : > { %2047 = vmatmul.msk.bf16.gmra.mxu0 %vm590_vm0, %v2322_v11 }
  0x96   : > { %2048 = vmatmul.msk.bf16.gmra.mxu0 %vm590_vm0, %v2323_v15  ;;  %v2344_v15 = vld [vmem:[#allocation5 + $0x30] sm:$0xff] }
  0x97   : > { %916 = vmatpush.bf16.msra.mxu2 %v2344_v15 }
  0x9b   : > { %917 = vmatpush.bf16.msra.mxu2 %v2343_v16 }
  0x9f   : > { %918 = vmatpush.bf16.msra.mxu2 %v2342_v18 }
  0xa6   : > { %2049 = vmatmul.msk.bf16.gmra.mxu0 %vm590_vm0, %v2324_v20 }
  0xb3   : > { %v624_v21 = vpop.f32.mrf.mxu0 }
  0xb4   : > { %v625_v24 = vadd.f32 %v2846_v22, %v624_v21 }
  0xb6   : > { %v2853_v26 = vadd.f32 %v2849_v23, %v625_v24 }
  0xb8   : > { %v682_v29 = vmax.f32 %v2853_v26, 0.0 }
  0xbb   : > { %v626_v25 = vpop.f32.mrf.mxu0 }
  0xbc   : > { %v627_v27 = vadd.f32 %v2846_v22, %v626_v25  ;;  %v2341_v25 = vld [vmem:[#allocation5 + $0x18] sm:$0xff] }
  0xbd   : > { %919 = vmatpush.bf16.msra.mxu2 %v2341_v25 }
  0xbe   : > { %v2857_v28 = vadd.f32 %v2849_v23, %v627_v27 }
  0xc0   : > { %v683_v30 = vmax.f32 %v2857_v28, 0.0 }
  0xc2   : > { %v698_v31 = vpack.c.bf16 %v683_v30, %v682_v29 }
  0xc3   : > { %v629_v32 = vpop.f32.mrf.mxu0 }
  0xc4   : > { %782 = vmatmul.bf16.vlgmr.msra.gmra.mxu1 %v698_v31  ;;  %v630_v33 = vadd.f32 %v2846_v22, %v629_v32  ;;  %v2340_v32 = vld [vmem:[#allocation5 + $0x10] sm:$0xff] }
  0xc5   : > { %920 = vmatpush.bf16.msra.mxu2 %v2340_v32 }
  0xc6   : > { %v2863_v35 = vadd.f32 %v2849_v23, %v630_v33  ;;  %v2339_v33 = vld [vmem:[#allocation5 + $0x8] sm:$0xff] }
  0xc8   : > { %v684_v38 = vmax.f32 %v2863_v35, 0.0 }
  0xc9   : > { %921 = vmatpush.bf16.msra.mxu2 %v2339_v33 }
  0xcb   : > { %v631_v34 = vpop.f32.mrf.mxu0 }
  0xcc   : > { %v632_v36 = vadd.f32 %v2846_v22, %v631_v34 }
  0xce   : > { %v2867_v37 = vadd.f32 %v2849_v23, %v632_v36 }
  0xd0   : > { %v685_v39 = vmax.f32 %v2867_v37, 0.0 }
  0xd2   : > { %v699_v40 = vpack.c.bf16 %v685_v39, %v684_v38  ;;  %v2338_v38 = vld [vmem:[#allocation5] sm:$0xff] }
  0xd3   : > { %v634_v41 = vpop.f32.mrf.mxu0  ;;  %922 = vmatpush.bf16.msra.mxu2 %v2338_v38  ;;  %v2353_v38 = vld [vmem:[%s3416_s4 + $0x78] sm:$0xff] }
  0xd4   : > { %787 = vmatmul.bf16.gmra.mxu1 %v699_v40  ;;  %v635_v42 = vadd.f32 %v2846_v22, %v634_v41  ;;  %1092 = vmatpush.bf16.msra.mxu3 %v2353_v38 }
  0xd6   : > { %v2873_v44 = vadd.f32 %v2849_v23, %v635_v42 }
  0xd8   : > { %v686_v47 = vmax.f32 %v2873_v44, 0.0 }
  0xdb   : > { %v636_v43 = vpop.f32.mrf.mxu0 }
  0xdc   : > { %v637_v45 = vadd.f32 %v2846_v22, %v636_v43 }
  0xde   : > { %v2877_v46 = vadd.f32 %v2849_v23, %v637_v45 }
  0xe0   : > { %v687_v48 = vmax.f32 %v2877_v46, 0.0 }
  0xe2   : > { %v700_v49 = vpack.c.bf16 %v687_v48, %v686_v47  ;;  %v2934_v48 = vld [vmem:[%s3417_s5] ss:$0 sm:$0xff] }
  0xe3   : > { %v639_v50 = vpop.f32.mrf.mxu0 }
  0xe4   : > { %792 = vmatmul.bf16.gmra.mxu1 %v700_v49  ;;  %v640_v51 = vadd.f32 %v2846_v22, %v639_v50 }
  0xe6   : > { %v2883_v53 = vadd.f32 %v2849_v23, %v640_v51 }
  0xe8   : > { %v688_v56 = vmax.f32 %v2883_v53, 0.0 }
  0xeb   : > { %v641_v52 = vpop.f32.mrf.mxu0 }
  0xec   : > { %v642_v54 = vadd.f32 %v2846_v22, %v641_v52 }
  0xee   : > { %v2887_v55 = vadd.f32 %v2849_v23, %v642_v54 }
  0xf0   : > { %v689_v57 = vmax.f32 %v2887_v55, 0.0 }
  0xf2   : > { %v701_v58 = vpack.c.bf16 %v689_v57, %v688_v56 }
  0xf3   : > { %v644_v59 = vpop.f32.mrf.mxu0 }
  0xf4   : > { %797 = vmatmul.bf16.gmra.mxu1 %v701_v58  ;;  %v645_v60 = vadd.f32 %v2846_v22, %v644_v59 }
  0xf6   : > { %v2893_v62 = vadd.f32 %v2849_v23, %v645_v60 }
  0xf8   : > { %v690_v1 = vmax.f32 %v2893_v62, 0.0 }
  0xfb   : > { %v646_v61 = vpop.f32.mrf.mxu0 }
  0xfc   : > { %v647_v63 = vadd.f32 %v2846_v22, %v646_v61 }
  0xfe   : > { %v2897_v0 = vadd.f32 %v2849_v23, %v647_v63 }
 0x100   : > { %v691_v2 = vmax.f32 %v2897_v0, 0.0 }
 0x102   : > { %v702_v3 = vpack.c.bf16 %v691_v2, %v690_v1 }
 0x103   : > { %v649_v4 = vpop.f32.mrf.mxu0 }
 0x104   : > { %802 = vmatmul.bf16.gmra.mxu1 %v702_v3  ;;  %v650_v5 = vadd.f32 %v2846_v22, %v649_v4 }
 0x106   : > { %v2903_v7 = vadd.f32 %v2849_v23, %v650_v5 }
 0x108   : > { %v692_v11 = vmax.f32 %v2903_v7, 0.0 }
 0x10b   : > { %v651_v6 = vpop.f32.mrf.mxu0 }
 0x10c   : > { %v652_v8 = vadd.f32 %v2846_v22, %v651_v6 }
 0x10e   : > { %v2907_v9 = vadd.f32 %v2849_v23, %v652_v8 }
 0x110   : > { %v693_v12 = vmax.f32 %v2907_v9, 0.0 }
 0x112   : > { %v703_v13 = vpack.c.bf16 %v693_v12, %v692_v11 }
 0x113   : > { %v654_v14 = vpop.f32.mrf.mxu0 }
 0x114   : > { %807 = vmatmul.bf16.gmra.mxu1 %v703_v13  ;;  %v655_v17 = vadd.f32 %v2846_v22, %v654_v14 }
 0x116   : > { %v2913_v20 = vadd.f32 %v2849_v23, %v655_v17 }
 0x118   : > { %v694_v27 = vmax.f32 %v2913_v20, 0.0 }
 0x11b   : > { %v656_v19 = vpop.f32.mrf.mxu0 }
 0x11c   : > { %v657_v21 = vadd.f32 %v2846_v22, %v656_v19 }
 0x11e   : > { %v2917_v24 = vadd.f32 %v2849_v23, %v657_v21 }
 0x120   : > { %v695_v29 = vmax.f32 %v2917_v24, 0.0 }
 0x122   : > { %v704_v30 = vpack.c.bf16 %v695_v29, %v694_v27 }
 0x123   : > { %v659_v31 = vpop.f32.mrf.mxu0 }
 0x124   : > { %812 = vmatmul.bf16.gmra.mxu1 %v704_v30  ;;  %v660_v34 = vadd.f32 %v2846_v22, %v659_v31 }
 0x126   : > { %v2923_v39 = vadd.f32 %v2849_v23, %v660_v34 }
 0x128   : > { %v696_v42 = vmax.f32 %v2923_v39, 0.0 }
 0x12b   : > { %v661_v36 = vpop.f32.mrf.mxu0 }
 0x12c   : > { %v662_v40 = vadd.f32 %v2846_v22, %v661_v36 }
 0x12e   : > { %v2927_v41 = vadd.f32 %v2849_v23, %v662_v40 }
 0x130   : > { %v697_v43 = vmax.f32 %v2927_v41, 0.0 }
 0x132   : > { %v705_v45 = vpack.c.bf16 %v697_v43, %v696_v42  ;;  %v2352_v42 = vld [vmem:[%s3416_s4 + $0x70] sm:$0xff]  ;;  %v2351_v43 = vld [vmem:[%s3416_s4 + $0x68] sm:$0xff] }
 0x133   : > { %1093 = vmatpush.bf16.msra.mxu3 %v2352_v42 }
 0x134   : > { %817 = vmatmul.bf16.gmra.mxu1 %v705_v45 }
 0x137   : > { %1094 = vmatpush.bf16.msra.mxu3 %v2351_v43 }
 0x141   : > { %v783_v47 = vpop.f32.mrf.mxu1 }
 0x142   : > { %v784_v49 = vadd.f32 %v2934_v48, %v783_v47 }
 0x144   : > { %v823_v51 = vmax.f32 %v784_v49, 0.0 }
 0x149   : > { %v785_v50 = vpop.f32.mrf.mxu1 }
 0x14a   : > { %v786_v22 = vadd.f32 %v2934_v48, %v785_v50 }
 0x14c   : > { %v824_v23 = vmax.f32 %v786_v22, 0.0 }
 0x14e   : > { %v839_v52 = vpack.c.bf16 %v824_v23, %v823_v51 }
 0x150   : > { %923 = vmatmul.bf16.vlgmr.msra.gmra.mxu2 %v839_v52  ;;  %v2350_v52 = vld [vmem:[%s3416_s4 + $0x60] sm:$0xff] }
 0x151   : > { %v788_v54 = vpop.f32.mrf.mxu1  ;;  %1095 = vmatpush.bf16.msra.mxu3 %v2350_v52 }
 0x152   : > { %v789_v56 = vadd.f32 %v2934_v48, %v788_v54  ;;  %v2349_v54 = vld [vmem:[%s3416_s4 + $0x58] sm:$0xff] }
 0x154   : > { %v825_v59 = vmax.f32 %v789_v56, 0.0 }
 0x155   : > { %1096 = vmatpush.bf16.msra.mxu3 %v2349_v54 }
 0x159   : > { %v790_v57 = vpop.f32.mrf.mxu1 }
 0x15a   : > { %v791_v58 = vadd.f32 %v2934_v48, %v790_v57 }
 0x15c   : > { %v826_v60 = vmax.f32 %v791_v58, 0.0  ;;  %v2348_v58 = vld [vmem:[%s3416_s4 + $0x50] sm:$0xff] }
 0x15d   : > { %1097 = vmatpush.bf16.msra.mxu3 %v2348_v58 }
 0x15e   : > { %v840_v61 = vpack.c.bf16 %v826_v60, %v825_v59 }
 0x160   : > { %928 = vmatmul.bf16.gmra.mxu2 %v840_v61 }
 0x161   : > { %v793_v63 = vpop.f32.mrf.mxu1 }
 0x162   : > { %v794_v1 = vadd.f32 %v2934_v48, %v793_v63  ;;  %v2347_v63 = vld [vmem:[%s3416_s4 + $0x48] sm:$0xff] }
 0x163   : > { %1098 = vmatpush.bf16.msra.mxu3 %v2347_v63  ;;  %v2357_v63 = vld [vmem:[#allocation5 + $0x58] sm:$0xff] }
 0x164   : > { %v827_v4 = vmax.f32 %v794_v1, 0.0 }
 0x169   : > { %v795_v2 = vpop.f32.mrf.mxu1 }
 0x16a   : > { %v796_v3 = vadd.f32 %v2934_v48, %v795_v2  ;;  %v2346_v2 = vld [vmem:[%s3416_s4 + $0x40] sm:$0xff] }
 0x16b   : > { %1099 = vmatpush.bf16.msra.mxu3 %v2346_v2 }
 0x16c   : > { %v828_v5 = vmax.f32 %v796_v3, 0.0  ;;  %v2979_v3 = vld [vmem:[%s3419_s7] ss:$0 sm:$0xff] }
 0x16e   : > { %v841_v6 = vpack.c.bf16 %v828_v5, %v827_v4  ;;  %v2361_v5 = vld [vmem:[#allocation5 + $0x78] sm:$0xff] }
 0x16f   : > { %1235 = vmatpush.bf16.msrb.mxu0 %v2361_v5 }
 0x170   : > { %933 = vmatmul.bf16.gmra.mxu2 %v841_v6  ;;  %v2983_v6 = vld [vmem:[%s2786_s26 + $0x1] ss:$0 sm:$0xff] }
 0x171   : > { %v798_v8 = vpop.f32.mrf.mxu1 }
 0x172   : > { %v799_v10 = vadd.f32 %v2934_v48, %v798_v8 }
 0x174   : > { %v829_v13 = vmax.f32 %v799_v10, 0.0 }
 0x179   : > { %v800_v11 = vpop.f32.mrf.mxu1 }
 0x17a   : > { %v801_v12 = vadd.f32 %v2934_v48, %v800_v11 }
 0x17c   : > { %v830_v14 = vmax.f32 %v801_v12, 0.0 }
 0x17e   : > { %v842_v15 = vpack.c.bf16 %v830_v14, %v829_v13 }
 0x180   : > { %938 = vmatmul.bf16.gmra.mxu2 %v842_v15 }
 0x181   : > { %v803_v16 = vpop.f32.mrf.mxu1 }
 0x182   : > { %v804_v17 = vadd.f32 %v2934_v48, %v803_v16 }
 0x184   : > { %v831_v21 = vmax.f32 %v804_v17, 0.0 }
 0x189   : > { %v805_v18 = vpop.f32.mrf.mxu1 }
 0x18a   : > { %v806_v19 = vadd.f32 %v2934_v48, %v805_v18 }
 0x18c   : > { %v832_v25 = vmax.f32 %v806_v19, 0.0  ;;  %v2360_v19 = vld [vmem:[#allocation5 + $0x70] sm:$0xff] }
 0x18d   : > { %1236 = vmatpush.bf16.msrb.mxu0 %v2360_v19 }
 0x18e   : > { %v843_v27 = vpack.c.bf16 %v832_v25, %v831_v21 }
 0x190   : > { %943 = vmatmul.bf16.gmra.mxu2 %v843_v27 }
 0x191   : > { %v808_v29 = vpop.f32.mrf.mxu1 }
 0x192   : > { %v809_v30 = vadd.f32 %v2934_v48, %v808_v29 }
 0x194   : > { %v833_v33 = vmax.f32 %v809_v30, 0.0 }
 0x199   : > { %v810_v31 = vpop.f32.mrf.mxu1 }
 0x19a   : > { %v811_v32 = vadd.f32 %v2934_v48, %v810_v31 }
 0x19c   : > { %v834_v34 = vmax.f32 %v811_v32, 0.0 }
 0x19e   : > { %v844_v36 = vpack.c.bf16 %v834_v34, %v833_v33 }
 0x1a0   : > { %948 = vmatmul.bf16.gmra.mxu2 %v844_v36  ;;  %v2359_v36 = vld [vmem:[#allocation5 + $0x68] sm:$0xff] }
 0x1a1   : > { %v813_v40 = vpop.f32.mrf.mxu1  ;;  %1237 = vmatpush.bf16.msrb.mxu0 %v2359_v36 }
 0x1a2   : > { %v814_v45 = vadd.f32 %v2934_v48, %v813_v40 }
 0x1a4   : > { %v835_v50 = vmax.f32 %v814_v45, 0.0 }
 0x1a9   : > { %v815_v47 = vpop.f32.mrf.mxu1 }
 0x1aa   : > { %v816_v49 = vadd.f32 %v2934_v48, %v815_v47 }
 0x1ac   : > { %v836_v22 = vmax.f32 %v816_v49, 0.0 }
 0x1ae   : > { %v845_v51 = vpack.c.bf16 %v836_v22, %v835_v50 }
 0x1b0   : > { %953 = vmatmul.bf16.gmra.mxu2 %v845_v51  ;;  %v2358_v51 = vld [vmem:[#allocation5 + $0x60] sm:$0xff] }
 0x1b1   : > { %v818_v23 = vpop.f32.mrf.mxu1  ;;  %1238 = vmatpush.bf16.msrb.mxu0 %v2358_v51 }
 0x1b2   : > { %v819_v56 = vadd.f32 %v2934_v48, %v818_v23 }
 0x1b4   : > { %v837_v60 = vmax.f32 %v819_v56, 0.0 }
 0x1b5   : > { %1239 = vmatpush.bf16.msrb.mxu0 %v2357_v63 }
 0x1b9   : > { %v820_v57 = vpop.f32.mrf.mxu1 }
 0x1ba   : > { %v821_v59 = vadd.f32 %v2934_v48, %v820_v57 }
 0x1bc   : > { %v838_v61 = vmax.f32 %v821_v59, 0.0 }
 0x1be   : > { %v846_v1 = vpack.c.bf16 %v838_v61, %v837_v60 }
 0x1c0   : > { %958 = vmatmul.bf16.gmra.mxu2 %v846_v1 }
 0x1d3   : > { %v924_v48 = vpop.f32.mrf.mxu2 }
 0x1d4   : > { %v925_v4 = vadd.f32 %v2979_v3, %v924_v48 }
 0x1d6   : > { %v964_v8 = vadd.f32 %v925_v4, %v2853_v26 }
 0x1d8   : > { %v2988_v12 = vadd.f32 %v2983_v6, %v964_v8 }
 0x1da   : > { %v998_v15 = vmax.f32 %v2988_v12, 0.0 }
 0x1db   : > { %v926_v10 = vpop.f32.mrf.mxu2 }
 0x1dc   : > { %v927_v11 = vadd.f32 %v2979_v3, %v926_v10 }
 0x1de   : > { %v965_v13 = vadd.f32 %v927_v11, %v2857_v28 }
 0x1e0   : > { %v2992_v14 = vadd.f32 %v2983_v6, %v965_v13 }
 0x1e2   : > { %v999_v16 = vmax.f32 %v2992_v14, 0.0 }
 0x1e3   : > { %v929_v17 = vpop.f32.mrf.mxu2 }
 0x1e4   : > { %v1014_v18 = vpack.c.bf16 %v999_v16, %v998_v15  ;;  %v930_v26 = vadd.f32 %v2979_v3, %v929_v17  ;;  %v2356_v15 = vld [vmem:[#allocation5 + $0x50] sm:$0xff] }
 0x1e5   : > { %1240 = vmatpush.bf16.msrb.mxu0 %v2356_v15 }
 0x1e6   : > { %1100 = vmatmul.bf16.vlgmr.msra.gmra.mxu3 %v1014_v18  ;;  %v966_v21 = vadd.f32 %v930_v26, %v2863_v35 }
 0x1e8   : > { %v3000_v28 = vadd.f32 %v2983_v6, %v966_v21 }
 0x1ea   : > { %v1000_v31 = vmax.f32 %v3000_v28, 0.0 }
 0x1eb   : > { %v931_v25 = vpop.f32.mrf.mxu2 }
 0x1ec   : > { %v932_v27 = vadd.f32 %v2979_v3, %v931_v25 }
 0x1ee   : > { %v967_v29 = vadd.f32 %v932_v27, %v2867_v37 }
 0x1f0   : > { %v3004_v30 = vadd.f32 %v2983_v6, %v967_v29 }
 0x1f2   : > { %v1001_v32 = vmax.f32 %v3004_v30, 0.0 }
 0x1f3   : > { %v934_v33 = vpop.f32.mrf.mxu2 }
 0x1f4   : > { %v1015_v34 = vpack.c.bf16 %v1001_v32, %v1000_v31  ;;  %v935_v35 = vadd.f32 %v2979_v3, %v934_v33  ;;  %v2355_v31 = vld [vmem:[#allocation5 + $0x48] sm:$0xff]  ;;  %v2354_v32 = vld [vmem:[#allocation5 + $0x40] sm:$0xff] }
 0x1f5   : > { %1241 = vmatpush.bf16.msrb.mxu0 %v2355_v31 }
 0x1f6   : > { %1105 = vmatmul.bf16.gmra.mxu3 %v1015_v34  ;;  %v968_v38 = vadd.f32 %v935_v35, %v2873_v44 }
 0x1f8   : > { %v3012_v37 = vadd.f32 %v2983_v6, %v968_v38 }
 0x1f9   : > { %1242 = vmatpush.bf16.msrb.mxu0 %v2354_v32 }
 0x1fa   : > { %v1002_v47 = vmax.f32 %v3012_v37, 0.0 }
 0x1fb   : > { %v936_v40 = vpop.f32.mrf.mxu2 }
 0x1fc   : > { %v937_v42 = vadd.f32 %v2979_v3, %v936_v40 }
 0x1fe   : > { %v969_v43 = vadd.f32 %v937_v42, %v2877_v46 }
 0x200   : > { %v3016_v45 = vadd.f32 %v2983_v6, %v969_v43 }
 0x202   : > { %v1003_v49 = vmax.f32 %v3016_v45, 0.0 }
 0x203   : > { %v939_v50 = vpop.f32.mrf.mxu2 }
 0x204   : > { %v1016_v22 = vpack.c.bf16 %v1003_v49, %v1002_v47  ;;  %v940_v44 = vadd.f32 %v2979_v3, %v939_v50 }
 0x206   : > { %1110 = vmatmul.bf16.gmra.mxu3 %v1016_v22  ;;  %v970_v23 = vadd.f32 %v940_v44, %v2883_v53 }
 0x208   : > { %v3024_v46 = vadd.f32 %v2983_v6, %v970_v23 }
 0x20a   : > { %v1004_v58 = vmax.f32 %v3024_v46, 0.0 }
 0x20b   : > { %v941_v52 = vpop.f32.mrf.mxu2 }
 0x20c   : > { %v942_v54 = vadd.f32 %v2979_v3, %v941_v52 }
 0x20e   : > { %v971_v56 = vadd.f32 %v942_v54, %v2887_v55 }
 0x210   : > { %v3028_v57 = vadd.f32 %v2983_v6, %v971_v56 }
 0x212   : > { %v1005_v59 = vmax.f32 %v3028_v57, 0.0 }
 0x213   : > { %v944_v60 = vpop.f32.mrf.mxu2 }
 0x214   : > { %v1017_v61 = vpack.c.bf16 %v1005_v59, %v1004_v58  ;;  %v945_v53 = vadd.f32 %v2979_v3, %v944_v60 }
 0x216   : > { %1115 = vmatmul.bf16.gmra.mxu3 %v1017_v61  ;;  %v972_v1 = vadd.f32 %v945_v53, %v2893_v62  ;;  %v2368_v53 = vld [vmem:[%s3416_s4 + $0xb0] sm:$0xff] }
 0x218   : > { %v3036_v55 = vadd.f32 %v2983_v6, %v972_v1 }
 0x21a   : > { %v1006_v8 = vmax.f32 %v3036_v55, 0.0 }
 0x21b   : > { %v946_v2 = vpop.f32.mrf.mxu2 }
 0x21c   : > { %v947_v48 = vadd.f32 %v2979_v3, %v946_v2 }
 0x21e   : > { %v973_v4 = vadd.f32 %v947_v48, %v2897_v0 }
 0x220   : > { %v3040_v5 = vadd.f32 %v2983_v6, %v973_v4 }
 0x222   : > { %v1007_v10 = vmax.f32 %v3040_v5, 0.0 }
 0x223   : > { %v949_v11 = vpop.f32.mrf.mxu2 }
 0x224   : > { %v1018_v13 = vpack.c.bf16 %v1007_v10, %v1006_v8  ;;  %v950_v62 = vadd.f32 %v2979_v3, %v949_v11  ;;  %v2367_v11 = vld [vmem:[%s3416_s4 + $0xa8] sm:$0xff] }
 0x226   : > { %1120 = vmatmul.bf16.gmra.mxu3 %v1018_v13  ;;  %v974_v16 = vadd.f32 %v950_v62, %v2903_v7 }
 0x228   : > { %v3048_v0 = vadd.f32 %v2983_v6, %v974_v16 }
 0x22a   : > { %v1008_v21 = vmax.f32 %v3048_v0, 0.0 }
 0x22b   : > { %v951_v17 = vpop.f32.mrf.mxu2 }
 0x22c   : > { %v952_v18 = vadd.f32 %v2979_v3, %v951_v17 }
 0x22e   : > { %v975_v26 = vadd.f32 %v952_v18, %v2907_v9 }
 0x230   : > { %v3052_v19 = vadd.f32 %v2983_v6, %v975_v26 }
 0x232   : > { %v1009_v25 = vmax.f32 %v3052_v19, 0.0 }
 0x233   : > { %v954_v27 = vpop.f32.mrf.mxu2 }
 0x234   : > { %v1019_v29 = vpack.c.bf16 %v1009_v25, %v1008_v21  ;;  %v955_v7 = vadd.f32 %v2979_v3, %v954_v27  ;;  %v2366_v21 = vld [vmem:[%s3416_s4 + $0xa0] sm:$0xff] }
 0x236   : > { %1125 = vmatmul.bf16.gmra.mxu3 %v1019_v29  ;;  %v976_v33 = vadd.f32 %v955_v7, %v2913_v20 }
 0x238   : > { %v3060_v35 = vadd.f32 %v2983_v6, %v976_v33 }
 0x23a   : > { %v1010_v40 = vmax.f32 %v3060_v35, 0.0 }
 0x23b   : > { %v956_v34 = vpop.f32.mrf.mxu2 }
 0x23c   : > { %v957_v9 = vadd.f32 %v2979_v3, %v956_v34  ;;  %v2365_v34 = vld [vmem:[%s3416_s4 + $0x98] sm:$0xff] }
 0x23e   : > { %v977_v36 = vadd.f32 %v957_v9, %v2917_v24 }
 0x240   : > { %v3064_v38 = vadd.f32 %v2983_v6, %v977_v36 }
 0x242   : > { %v1011_v42 = vmax.f32 %v3064_v38, 0.0 }
 0x243   : > { %v959_v43 = vpop.f32.mrf.mxu2 }
 0x244   : > { %v1020_v47 = vpack.c.bf16 %v1011_v42, %v1010_v40  ;;  %v960_v20 = vadd.f32 %v2979_v3, %v959_v43 }
 0x246   : > { %1130 = vmatmul.bf16.gmra.mxu3 %v1020_v47  ;;  %v978_v49 = vadd.f32 %v960_v20, %v2923_v39  ;;  %v2369_v39 = vld [vmem:[%s3416_s4 + $0xb8] sm:$0xff] }
 0x247   : > { %1412 = vmatpush.bf16.msrb.mxu1 %v2369_v39 }
 0x248   : > { %v3072_v44 = vadd.f32 %v2983_v6, %v978_v49  ;;  %v2364_v49 = vld [vmem:[%s3416_s4 + $0x90] sm:$0xff] }
 0x24a   : > { %v1012_v23 = vmax.f32 %v3072_v44, 0.0 }
 0x24b   : > { %v961_v50 = vpop.f32.mrf.mxu2  ;;  %1413 = vmatpush.bf16.msrb.mxu1 %v2368_v53 }
 0x24c   : > { %v962_v22 = vadd.f32 %v2979_v3, %v961_v50  ;;  %v3086_v3 = vld [vmem:[%s3417_s5 + $0x1] ss:$0 sm:$0xff] }
 0x24e   : > { %v979_v24 = vadd.f32 %v962_v22, %v2927_v41 }
 0x24f   : > { %1414 = vmatpush.bf16.msrb.mxu1 %v2367_v11 }
 0x250   : > { %v3076_v51 = vadd.f32 %v2983_v6, %v979_v24 }
 0x252   : > { %v1013_v52 = vmax.f32 %v3076_v51, 0.0 }
 0x253   : > { %1415 = vmatpush.bf16.msrb.mxu1 %v2366_v21 }
 0x254   : > { %v1021_v54 = vpack.c.bf16 %v1013_v52, %v1012_v23 }
 0x256   : > { %1135 = vmatmul.bf16.gmra.mxu3 %v1021_v54 }
 0x257   : > { %1416 = vmatpush.bf16.msrb.mxu1 %v2365_v34 }
 0x25b   : > { %1417 = vmatpush.bf16.msrb.mxu1 %v2364_v49 }
 0x269   : > { %v1101_v56 = vpop.f32.mrf.mxu3 }
 0x26a   : > { %v1102_v41 = vadd.f32 %v3086_v3, %v1101_v56  ;;  %v2363_v56 = vld [vmem:[%s3416_s4 + $0x88] sm:$0xff] }
 0x26b   : > { %1418 = vmatpush.bf16.msrb.mxu1 %v2363_v56 }
 0x26c   : > { %v1141_v59 = vmax.f32 %v1102_v41, 0.0 }
 0x271   : > { %v1103_v6 = vpop.f32.mrf.mxu3 }
 0x272   : > { %v1104_v58 = vadd.f32 %v3086_v3, %v1103_v6 }
 0x274   : > { %v1142_v60 = vmax.f32 %v1104_v58, 0.0 }
 0x276   : > { %v1157_v61 = vpack.c.bf16 %v1142_v60, %v1141_v59 }
 0x278   : > { %1243 = vmatmul.bf16.vlgmr.msrb.gmra.mxu0 %v1157_v61 }
 0x279   : > { %v1106_v63 = vpop.f32.mrf.mxu3 }
 0x27a   : > { %v1107_v1 = vadd.f32 %v3086_v3, %v1106_v63 }
 0x27c   : > { %v1143_v4 = vmax.f32 %v1107_v1, 0.0  ;;  %v2362_v1 = vld [vmem:[%s3416_s4 + $0x80] sm:$0xff] }
 0x27d   : > { %1419 = vmatpush.bf16.msrb.mxu1 %v2362_v1  ;;  %v2373_v1 = vld [vmem:[#allocation5 + $0x98] sm:$0xff] }
 0x281   : > { %v1108_v2 = vpop.f32.mrf.mxu3 }
 0x282   : > { %v1109_v48 = vadd.f32 %v3086_v3, %v1108_v2 }
 0x284   : > { %v1144_v8 = vmax.f32 %v1109_v48, 0.0 }
 0x286   : > { %v1158_v10 = vpack.c.bf16 %v1144_v8, %v1143_v4 }
 0x288   : > { %1248 = vmatmul.bf16.gmra.mxu0 %v1158_v10 }
 0x289   : > { %v1111_v13 = vpop.f32.mrf.mxu3 }
 0x28a   : > { %v1112_v62 = vadd.f32 %v3086_v3, %v1111_v13  ;;  %v2377_v13 = vld [vmem:[#allocation5 + $0xb8] sm:$0xff] }
 0x28b   : > { %1555 = vmatpush.bf16.msrb.mxu2 %v2377_v13 }
 0x28c   : > { %v1145_v17 = vmax.f32 %v1112_v62, 0.0  ;;  %v3128_v62 = vld [vmem:[%s3419_s7 + $0x1] ss:$0 sm:$0xff] }
 0x291   : > { %v1113_v15 = vpop.f32.mrf.mxu3 }
 0x292   : > { %v1114_v16 = vadd.f32 %v3086_v3, %v1113_v15 }
 0x294   : > { %v1146_v18 = vmax.f32 %v1114_v16, 0.0 }
 0x296   : > { %v1159_v26 = vpack.c.bf16 %v1146_v18, %v1145_v17  ;;  %v3132_v17 = vld [vmem:[%s2786_s26 + $0x2] ss:$0 sm:$0xff] }
 0x298   : > { %1253 = vmatmul.bf16.gmra.mxu0 %v1159_v26 }
 0x299   : > { %v1116_v25 = vpop.f32.mrf.mxu3 }
 0x29a   : > { %v1117_v27 = vadd.f32 %v3086_v3, %v1116_v25 }
 0x29c   : > { %v1147_v31 = vmax.f32 %v1117_v27, 0.0 }
 0x2a1   : > { %v1118_v29 = vpop.f32.mrf.mxu3 }
 0x2a2   : > { %v1119_v7 = vadd.f32 %v3086_v3, %v1118_v29  ;;  %v2376_v29 = vld [vmem:[#allocation5 + $0xb0] sm:$0xff] }
 0x2a3   : > { %1556 = vmatpush.bf16.msrb.mxu2 %v2376_v29 }
 0x2a4   : > { %v1148_v32 = vmax.f32 %v1119_v7, 0.0 }
 0x2a6   : > { %v1160_v33 = vpack.c.bf16 %v1148_v32, %v1147_v31 }
 0x2a8   : > { %1258 = vmatmul.bf16.gmra.mxu0 %v1160_v33 }
 0x2a9   : > { %v1121_v9 = vpop.f32.mrf.mxu3 }
 0x2aa   : > { %v1122_v36 = vadd.f32 %v3086_v3, %v1121_v9 }
 0x2ac   : > { %v1149_v43 = vmax.f32 %v1122_v36, 0.0 }
 0x2b1   : > { %v1123_v40 = vpop.f32.mrf.mxu3 }
 0x2b2   : > { %v1124_v42 = vadd.f32 %v3086_v3, %v1123_v40 }
 0x2b4   : > { %v1150_v47 = vmax.f32 %v1124_v42, 0.0 }
 0x2b6   : > { %v1161_v20 = vpack.c.bf16 %v1150_v47, %v1149_v43  ;;  %v2375_v43 = vld [vmem:[#allocation5 + $0xa8] sm:$0xff] }
 0x2b7   : > { %1557 = vmatpush.bf16.msrb.mxu2 %v2375_v43 }
 0x2b8   : > { %1263 = vmatmul.bf16.gmra.mxu0 %v1161_v20 }
 0x2b9   : > { %v1126_v50 = vpop.f32.mrf.mxu3 }
 0x2ba   : > { %v1127_v22 = vadd.f32 %v3086_v3, %v1126_v50 }
 0x2bc   : > { %v1151_v52 = vmax.f32 %v1127_v22, 0.0 }
 0x2c1   : > { %v1128_v24 = vpop.f32.mrf.mxu3 }
 0x2c2   : > { %v1129_v23 = vadd.f32 %v3086_v3, %v1128_v24 }
 0x2c4   : > { %v1152_v54 = vmax.f32 %v1129_v23, 0.0 }
 0x2c6   : > { %v1162_v39 = vpack.c.bf16 %v1152_v54, %v1151_v52 }
 0x2c8   : > { %1268 = vmatmul.bf16.gmra.mxu0 %v1162_v39  ;;  %v2374_v39 = vld [vmem:[#allocation5 + $0xa0] sm:$0xff] }
 0x2c9   : > { %v1131_v41 = vpop.f32.mrf.mxu3  ;;  %1558 = vmatpush.bf16.msrb.mxu2 %v2374_v39 }
 0x2ca   : > { %v1132_v6 = vadd.f32 %v3086_v3, %v1131_v41 }
 0x2cc   : > { %v1153_v60 = vmax.f32 %v1132_v6, 0.0 }
 0x2cd   : > { %1559 = vmatpush.bf16.msrb.mxu2 %v2373_v1 }
 0x2d1   : > { %v1133_v58 = vpop.f32.mrf.mxu3 }
 0x2d2   : > { %v1134_v59 = vadd.f32 %v3086_v3, %v1133_v58 }
 0x2d4   : > { %v1154_v61 = vmax.f32 %v1134_v59, 0.0 }
 0x2d6   : > { %v1163_v53 = vpack.c.bf16 %v1154_v61, %v1153_v60 }
 0x2d8   : > { %1273 = vmatmul.bf16.gmra.mxu0 %v1163_v53 }
 0x2d9   : > { %v1136_v63 = vpop.f32.mrf.mxu3 }
 0x2da   : > { %v1137_v2 = vadd.f32 %v3086_v3, %v1136_v63 }
 0x2dc   : > { %v1155_v8 = vmax.f32 %v1137_v2, 0.0 }
 0x2e1   : > { %v1138_v48 = vpop.f32.mrf.mxu3 }
 0x2e2   : > { %v1139_v4 = vadd.f32 %v3086_v3, %v1138_v48 }
 0x2e4   : > { %v1156_v10 = vmax.f32 %v1139_v4, 0.0 }
 0x2e6   : > { %v1164_v11 = vpack.c.bf16 %v1156_v10, %v1155_v8 }
 0x2e8   : > { %1278 = vmatmul.bf16.gmra.mxu0 %v1164_v11 }
 0x2f5   : > { %v1244_v15 = vpop.f32.mrf.mxu0 }
 0x2f6   : > { %v1245_v16 = vadd.f32 %v3128_v62, %v1244_v15 }
 0x2f8   : > { %v1284_v18 = vadd.f32 %v1245_v16, %v2988_v12 }
 0x2fa   : > { %v3137_v21 = vadd.f32 %v3132_v17, %v1284_v18  ;;  %v2372_v18 = vld [vmem:[#allocation5 + $0x90] sm:$0xff] }
 0x2fb   : > { %1560 = vmatpush.bf16.msrb.mxu2 %v2372_v18 }
 0x2fc   : > { %v1318_v7 = vmax.f32 %v3137_v21, 0.0 }
 0x2fd   : > { %v1246_v26 = vpop.f32.mrf.mxu0 }
 0x2fe   : > { %v1247_v3 = vadd.f32 %v3128_v62, %v1246_v26 }
 0x300   : > { %v1285_v25 = vadd.f32 %v1247_v3, %v2992_v14 }
 0x302   : > { %v3141_v27 = vadd.f32 %v3132_v17, %v1285_v25 }
 0x304   : > { %v1319_v31 = vmax.f32 %v3141_v27, 0.0 }
 0x305   : > { %v1249_v32 = vpop.f32.mrf.mxu0 }
 0x306   : > { %v1334_v33 = vpack.c.bf16 %v1319_v31, %v1318_v7  ;;  %v1250_v12 = vadd.f32 %v3128_v62, %v1249_v32 }
 0x308   : > { %1420 = vmatmul.bf16.vlgmr.msrb.gmra.mxu1 %v1334_v33  ;;  %v1286_v34 = vadd.f32 %v1250_v12, %v3000_v28 }
 0x30a   : > { %v3149_v14 = vadd.f32 %v3132_v17, %v1286_v34  ;;  %v2371_v34 = vld [vmem:[#allocation5 + $0x88] sm:$0xff] }
 0x30b   : > { %1561 = vmatpush.bf16.msrb.mxu2 %v2371_v34 }
 0x30c   : > { %v1320_v47 = vmax.f32 %v3149_v14, 0.0 }
 0x30d   : > { %v1251_v9 = vpop.f32.mrf.mxu0 }
 0x30e   : > { %v1252_v36 = vadd.f32 %v3128_v62, %v1251_v9 }
 0x310   : > { %v1287_v40 = vadd.f32 %v1252_v36, %v3004_v30 }
 0x312   : > { %v3153_v42 = vadd.f32 %v3132_v17, %v1287_v40 }
 0x314   : > { %v1321_v20 = vmax.f32 %v3153_v42, 0.0 }
 0x315   : > { %v1254_v49 = vpop.f32.mrf.mxu0 }
 0x316   : > { %v1335_v50 = vpack.c.bf16 %v1321_v20, %v1320_v47  ;;  %v1255_v28 = vadd.f32 %v3128_v62, %v1254_v49  ;;  %v2370_v47 = vld [vmem:[#allocation5 + $0x80] sm:$0xff] }
 0x317   : > { %1562 = vmatpush.bf16.msrb.mxu2 %v2370_v47 }
 0x318   : > { %1425 = vmatmul.bf16.gmra.mxu1 %v1335_v50  ;;  %v1288_v22 = vadd.f32 %v1255_v28, %v3012_v37 }
 0x31a   : > { %v3161_v30 = vadd.f32 %v3132_v17, %v1288_v22 }
 0x31c   : > { %v1322_v56 = vmax.f32 %v3161_v30, 0.0 }
 0x31d   : > { %v1256_v24 = vpop.f32.mrf.mxu0 }
 0x31e   : > { %v1257_v23 = vadd.f32 %v3128_v62, %v1256_v24 }
 0x320   : > { %v1289_v52 = vadd.f32 %v1257_v23, %v3016_v45 }
 0x322   : > { %v3165_v54 = vadd.f32 %v3132_v17, %v1289_v52 }
 0x324   : > { %v1323_v41 = vmax.f32 %v3165_v54, 0.0 }
 0x325   : > { %v1259_v6 = vpop.f32.mrf.mxu0 }
 0x326   : > { %v1336_v58 = vpack.c.bf16 %v1323_v41, %v1322_v56  ;;  %v1260_v37 = vadd.f32 %v3128_v62, %v1259_v6 }
 0x328   : > { %1430 = vmatmul.bf16.gmra.mxu1 %v1336_v58  ;;  %v1290_v59 = vadd.f32 %v1260_v37, %v3024_v46 }
 0x32a   : > { %v3173_v45 = vadd.f32 %v3132_v17, %v1290_v59 }
 0x32c   : > { %v1324_v2 = vmax.f32 %v3173_v45, 0.0 }
 0x32d   : > { %v1261_v60 = vpop.f32.mrf.mxu0 }
 0x32e   : > { %v1262_v61 = vadd.f32 %v3128_v62, %v1261_v60 }
 0x330   : > { %v1291_v53 = vadd.f32 %v1262_v61, %v3028_v57 }
 0x332   : > { %v3177_v63 = vadd.f32 %v3132_v17, %v1291_v53 }
 0x334   : > { %v1325_v48 = vmax.f32 %v3177_v63, 0.0 }
 0x335   : > { %v1264_v4 = vpop.f32.mrf.mxu0 }
 0x336   : > { %v1337_v8 = vpack.c.bf16 %v1325_v48, %v1324_v2  ;;  %v1265_v46 = vadd.f32 %v3128_v62, %v1264_v4 }
 0x338   : > { %1435 = vmatmul.bf16.gmra.mxu1 %v1337_v8  ;;  %v1292_v10 = vadd.f32 %v1265_v46, %v3036_v55  ;;  %v2384_v46 = vld [vmem:[%s3420_s8 + $0x30] sm:$0xff] }
 0x33a   : > { %v3185_v57 = vadd.f32 %v3132_v17, %v1292_v10 }
 0x33c   : > { %v1326_v26 = vmax.f32 %v3185_v57, 0.0 }
 0x33d   : > { %v1266_v11 = vpop.f32.mrf.mxu0 }
 0x33e   : > { %v1267_v13 = vadd.f32 %v3128_v62, %v1266_v11 }
 0x340   : > { %v1293_v15 = vadd.f32 %v1267_v13, %v3040_v5 }
 0x342   : > { %v3189_v16 = vadd.f32 %v3132_v17, %v1293_v15 }
 0x344   : > { %v1327_v3 = vmax.f32 %v3189_v16, 0.0 }
 0x345   : > { %v1269_v25 = vpop.f32.mrf.mxu0 }
 0x346   : > { %v1338_v29 = vpack.c.bf16 %v1327_v3, %v1326_v26  ;;  %v1270_v55 = vadd.f32 %v3128_v62, %v1269_v25  ;;  %v2383_v25 = vld [vmem:[%s3420_s8 + $0x28] sm:$0xff] }
 0x348   : > { %1440 = vmatmul.bf16.gmra.mxu1 %v1338_v29  ;;  %v1294_v7 = vadd.f32 %v1270_v55, %v3048_v0 }
 0x34a   : > { %v3197_v5 = vadd.f32 %v3132_v17, %v1294_v7 }
 0x34c   : > { %v1328_v9 = vmax.f32 %v3197_v5, 0.0 }
 0x34d   : > { %v1271_v31 = vpop.f32.mrf.mxu0 }
 0x34e   : > { %v1272_v32 = vadd.f32 %v3128_v62, %v1271_v31 }
 0x350   : > { %v1295_v33 = vadd.f32 %v1272_v32, %v3052_v19 }
 0x352   : > { %v3201_v12 = vadd.f32 %v3132_v17, %v1295_v33 }
 0x354   : > { %v1329_v36 = vmax.f32 %v3201_v12, 0.0 }
 0x355   : > { %v1274_v40 = vpop.f32.mrf.mxu0 }
 0x356   : > { %v1339_v43 = vpack.c.bf16 %v1329_v36, %v1328_v9  ;;  %v1275_v0 = vadd.f32 %v3128_v62, %v1274_v40  ;;  %v2382_v9 = vld [vmem:[%s3420_s8 + $0x20] sm:$0xff] }
 0x358   : > { %1445 = vmatmul.bf16.gmra.mxu1 %v1339_v43  ;;  %v1296_v20 = vadd.f32 %v1275_v0, %v3060_v35 }
 0x35a   : > { %v3209_v50 = vadd.f32 %v3132_v17, %v1296_v20 }
 0x35c   : > { %v1330_v24 = vmax.f32 %v3209_v50, 0.0 }
 0x35d   : > { %v1276_v49 = vpop.f32.mrf.mxu0 }
 0x35e   : > { %v1277_v19 = vadd.f32 %v3128_v62, %v1276_v49 }
 0x360   : > { %v1297_v28 = vadd.f32 %v1277_v19, %v3064_v38  ;;  %v2381_v19 = vld [vmem:[%s3420_s8 + $0x18] sm:$0xff] }
 0x362   : > { %v3213_v22 = vadd.f32 %v3132_v17, %v1297_v28 }
 0x364   : > { %v1331_v23 = vmax.f32 %v3213_v22, 0.0 }
 0x365   : > { %v1279_v52 = vpop.f32.mrf.mxu0 }
 0x366   : > { %v1340_v39 = vpack.c.bf16 %v1331_v23, %v1330_v24  ;;  %v1280_v56 = vadd.f32 %v3128_v62, %v1279_v52 }
 0x368   : > { %1450 = vmatmul.bf16.gmra.mxu1 %v1340_v39  ;;  %v1298_v35 = vadd.f32 %v1280_v56, %v3072_v44  ;;  %v3232_v44 = vld [vmem:[%s3417_s5 + $0x2] ss:$0 sm:$0xff] }
 0x36a   : > { %v3221_v58 = vadd.f32 %v3132_v17, %v1298_v35 }
 0x36c   : > { %v1332_v59 = vmax.f32 %v3221_v58, 0.0 }
 0x36d   : > { %v1281_v41 = vpop.f32.mrf.mxu0 }
 0x36e   : > { %v1282_v6 = vadd.f32 %v3128_v62, %v1281_v41  ;;  %v2385_v62 = vld [vmem:[%s3420_s8 + $0x38] sm:$0xff]  ;;  %v2380_v41 = vld [vmem:[%s3420_s8 + $0x10] sm:$0xff] }
 0x36f   : > { %1728 = vmatpush.bf16.msrb.mxu3 %v2385_v62  ;;  %v2379_v62 = vld [vmem:[%s3420_s8 + $0x8] sm:$0xff] }
 0x370   : > { %v1299_v38 = vadd.f32 %v1282_v6, %v3076_v51 }
 0x372   : > { %v3225_v37 = vadd.f32 %v3132_v17, %v1299_v38 }
 0x373   : > { %1729 = vmatpush.bf16.msrb.mxu3 %v2384_v46 }
 0x374   : > { %v1333_v60 = vmax.f32 %v3225_v37, 0.0 }
 0x376   : > { %v1341_v61 = vpack.c.bf16 %v1333_v60, %v1332_v59 }
 0x377   : > { %1730 = vmatpush.bf16.msrb.mxu3 %v2383_v25  ;;  %v3278_v25 = vld [vmem:[%s3419_s7 + $0x2] ss:$0 sm:$0xff] }
 0x378   : > { %1455 = vmatmul.bf16.gmra.mxu1 %v1341_v61 }
 0x37b   : > { %1731 = vmatpush.bf16.msrb.mxu3 %v2382_v9 }
 0x37f   : > { %1732 = vmatpush.bf16.msrb.mxu3 %v2381_v19 }
 0x383   : > { %1733 = vmatpush.bf16.msrb.mxu3 %v2380_v41 }
 0x385   : > { %v1421_v53 = vpop.f32.mrf.mxu1 }
 0x386   : > { %v1422_v51 = vadd.f32 %v3232_v44, %v1421_v53 }
 0x387   : > { %1734 = vmatpush.bf16.msrb.mxu3 %v2379_v62 }
 0x388   : > { %v1461_v2 = vmax.f32 %v1422_v51, 0.0 }
 0x38d   : > { %v1423_v17 = vpop.f32.mrf.mxu1 }
 0x38e   : > { %v1424_v1 = vadd.f32 %v3232_v44, %v1423_v17 }
 0x390   : > { %v1462_v48 = vmax.f32 %v1424_v1, 0.0 }
 0x392   : > { %v1477_v4 = vpack.c.bf16 %v1462_v48, %v1461_v2 }
 0x394   : > { %1563 = vmatmul.bf16.vlgmr.msrb.gmra.mxu2 %v1477_v4 }
 0x395   : > { %v1426_v8 = vpop.f32.mrf.mxu1 }
 0x396   : > { %v1427_v10 = vadd.f32 %v3232_v44, %v1426_v8 }
 0x398   : > { %v1463_v15 = vmax.f32 %v1427_v10, 0.0 }
 0x39d   : > { %v1428_v11 = vpop.f32.mrf.mxu1 }
 0x39e   : > { %v1429_v13 = vadd.f32 %v3232_v44, %v1428_v11  ;;  %v2378_v11 = vld [vmem:[%s3420_s8] sm:$0xff] }
 0x39f   : > { %1735 = vmatpush.bf16.msrb.mxu3 %v2378_v11 }
 0x3a0   : > { %v1464_v18 = vmax.f32 %v1429_v13, 0.0 }
 0x3a2   : > { %v1478_v26 = vpack.c.bf16 %v1464_v18, %v1463_v15 }
 0x3a4   : > { %1568 = vmatmul.bf16.gmra.mxu2 %v1478_v26 }
 0x3a5   : > { %v1431_v3 = vpop.f32.mrf.mxu1 }
 0x3a6   : > { %v1432_v29 = vadd.f32 %v3232_v44, %v1431_v3 }
 0x3a8   : > { %v1465_v31 = vmax.f32 %v1432_v29, 0.0 }
 0x3ad   : > { %v1433_v55 = vpop.f32.mrf.mxu1 }
 0x3ae   : > { %v1434_v7 = vadd.f32 %v3232_v44, %v1433_v55 }
 0x3b0   : > { %v1466_v32 = vmax.f32 %v1434_v7, 0.0 }
 0x3b2   : > { %v1479_v33 = vpack.c.bf16 %v1466_v32, %v1465_v31 }
 0x3b4   : > { %1573 = vmatmul.bf16.gmra.mxu2 %v1479_v33 }
 0x3b5   : > { %v1436_v34 = vpop.f32.mrf.mxu1 }
 0x3b6   : > { %v1437_v36 = vadd.f32 %v3232_v44, %v1436_v34 }
 0x3b8   : > { %v1467_v0 = vmax.f32 %v1437_v36, 0.0 }
 0x3bd   : > { %v1438_v40 = vpop.f32.mrf.mxu1 }
 0x3be   : > { %v1439_v43 = vadd.f32 %v3232_v44, %v1438_v40 }
 0x3c0   : > { %v1468_v47 = vmax.f32 %v1439_v43, 0.0 }
 0x3c2   : > { %v1480_v20 = vpack.c.bf16 %v1468_v47, %v1467_v0 }
 0x3c4   : > { %1578 = vmatmul.bf16.gmra.mxu2 %v1480_v20 }
 0x3c5   : > { %v1441_v49 = vpop.f32.mrf.mxu1 }
 0x3c6   : > { %v1442_v28 = vadd.f32 %v3232_v44, %v1441_v49 }
 0x3c8   : > { %v1469_v52 = vmax.f32 %v1442_v28, 0.0 }
 0x3cd   : > { %v1443_v24 = vpop.f32.mrf.mxu1 }
 0x3ce   : > { %v1444_v23 = vadd.f32 %v3232_v44, %v1443_v24 }
 0x3d0   : > { %v1470_v39 = vmax.f32 %v1444_v23, 0.0 }
 0x3d2   : > { %v1481_v56 = vpack.c.bf16 %v1470_v39, %v1469_v52 }
 0x3d4   : > { %1583 = vmatmul.bf16.gmra.mxu2 %v1481_v56 }
 0x3d5   : > { %v1446_v35 = vpop.f32.mrf.mxu1 }
 0x3d6   : > { %v1447_v6 = vadd.f32 %v3232_v44, %v1446_v35 }
 0x3d8   : > { %v1471_v60 = vmax.f32 %v1447_v6, 0.0 }
 0x3dd   : > { %v1448_v38 = vpop.f32.mrf.mxu1 }
 0x3de   : > { %v1449_v59 = vadd.f32 %v3232_v44, %v1448_v38 }
 0x3e0   : > { %v1472_v61 = vmax.f32 %v1449_v59, 0.0 }
 0x3e2   : > { %v1482_v53 = vpack.c.bf16 %v1472_v61, %v1471_v60 }
 0x3e4   : > { %1588 = vmatmul.bf16.gmra.mxu2 %v1482_v53 }
 0x3e5   : > { %v1451_v51 = vpop.f32.mrf.mxu1 }
 0x3e6   : > { %v1452_v17 = vadd.f32 %v3232_v44, %v1451_v51 }
 0x3e8   : > { %v1473_v48 = vmax.f32 %v1452_v17, 0.0 }
 0x3ed   : > { %v1453_v1 = vpop.f32.mrf.mxu1 }
 0x3ee   : > { %v1454_v2 = vadd.f32 %v3232_v44, %v1453_v1 }
 0x3f0   : > { %v1474_v4 = vmax.f32 %v1454_v2, 0.0 }
 0x3f2   : > { %v1483_v8 = vpack.c.bf16 %v1474_v4, %v1473_v48 }
 0x3f4   : > { %1593 = vmatmul.bf16.gmra.mxu2 %v1483_v8 }
 0x3f5   : > { %v1456_v46 = vpop.f32.mrf.mxu1 }
 0x3f6   : > { %v1457_v10 = vadd.f32 %v3232_v44, %v1456_v46 }
 0x3f8   : > { %v1475_v18 = vmax.f32 %v1457_v10, 0.0 }
 0x3fd   : > { %v1458_v13 = vpop.f32.mrf.mxu1 }
 0x3fe   : > { %v1459_v15 = vadd.f32 %v3232_v44, %v1458_v13 }
 0x400   : > { %v1476_v26 = vmax.f32 %v1459_v15, 0.0 }
 0x402   : > { %v1484_v3 = vpack.c.bf16 %v1476_v26, %v1475_v18 }
 0x404   : > { %1598 = vmatmul.bf16.gmra.mxu2 %v1484_v3 }
 0x417   : > { %v1564_v29 = vpop.f32.mrf.mxu2 }
 0x418   : > { %v1565_v55 = vadd.f32 %v3278_v25, %v1564_v29 }
 0x41a   : > { %v1604_v7 = vadd.f32 %v1565_v55, %v3137_v21 }
 0x41c   : > { %1620 = vst [vmem:[%s3284_s3] sm:$0xff] %v1604_v7  ;;  %v1636_v33 = vmax.f32 %v1604_v7, 0.0 }
 0x41f   : > { %v1566_v44 = vpop.f32.mrf.mxu2 }
 0x420   : > { %v1567_v31 = vadd.f32 %v3278_v25, %v1566_v44 }
 0x422   : > { %v1605_v32 = vadd.f32 %v1567_v31, %v3141_v27 }
 0x424   : > { %1621 = vst [vmem:[%s3284_s3 + $0x8] sm:$0xff] %v1605_v32  ;;  %v1637_v34 = vmax.f32 %v1605_v32, 0.0 }
 0x426   : > { %v1652_v9 = vpack.c.bf16 %v1637_v34, %v1636_v33 }
 0x427   : > { %v1569_v36 = vpop.f32.mrf.mxu2 }
 0x428   : > { %v1570_v21 = vadd.f32 %v3278_v25, %v1569_v36  ;;  %1736 = vmatmul.bf16.vlgmr.msrb.gmra.mxu3 %v1652_v9 }
 0x42a   : > { %v1606_v40 = vadd.f32 %v1570_v21, %v3149_v14 }
 0x42c   : > { %1622 = vst [vmem:[%s3284_s3 + $0x10] sm:$0xff] %v1606_v40  ;;  %v1638_v27 = vmax.f32 %v1606_v40, 0.0 }
 0x42f   : > { %v1571_v43 = vpop.f32.mrf.mxu2 }
 0x430   : > { %v1572_v0 = vadd.f32 %v3278_v25, %v1571_v43 }
 0x432   : > { %v1607_v47 = vadd.f32 %v1572_v0, %v3153_v42 }
 0x434   : > { %1623 = vst [vmem:[%s3284_s3 + $0x18] sm:$0xff] %v1607_v47  ;;  %v1639_v20 = vmax.f32 %v1607_v47, 0.0 }
 0x436   : > { %v1653_v49 = vpack.c.bf16 %v1639_v20, %v1638_v27 }
 0x437   : > { %v1574_v19 = vpop.f32.mrf.mxu2 }
 0x438   : > { %v1575_v28 = vadd.f32 %v3278_v25, %v1574_v19  ;;  %1741 = vmatmul.bf16.gmra.mxu3 %v1653_v49 }
 0x43a   : > { %v1608_v24 = vadd.f32 %v1575_v28, %v3161_v30 }
 0x43c   : > { %1624 = vst [vmem:[%s3284_s3 + $0x20] sm:$0xff] %v1608_v24  ;;  %v1640_v42 = vmax.f32 %v1608_v24, 0.0 }
 0x43f   : > { %v1576_v14 = vpop.f32.mrf.mxu2 }
 0x440   : > { %v1577_v23 = vadd.f32 %v3278_v25, %v1576_v14 }
 0x442   : > { %v1609_v52 = vadd.f32 %v1577_v23, %v3165_v54 }
 0x444   : > { %1625 = vst [vmem:[%s3284_s3 + $0x28] sm:$0xff] %v1609_v52  ;;  %v1641_v39 = vmax.f32 %v1609_v52, 0.0 }
 0x446   : > { %v1654_v56 = vpack.c.bf16 %v1641_v39, %v1640_v42 }
 0x447   : > { %v1579_v35 = vpop.f32.mrf.mxu2 }
 0x448   : > { %v1580_v41 = vadd.f32 %v3278_v25, %v1579_v35  ;;  %1746 = vmatmul.bf16.gmra.mxu3 %v1654_v56 }
 0x44a   : > { %v1610_v6 = vadd.f32 %v1580_v41, %v3173_v45 }
 0x44c   : > { %1626 = vst [vmem:[%s3284_s3 + $0x30] sm:$0xff] %v1610_v6  ;;  %v1642_v54 = vmax.f32 %v1610_v6, 0.0 }
 0x44f   : > { %v1581_v30 = vpop.f32.mrf.mxu2 }
 0x450   : > { %v1582_v38 = vadd.f32 %v3278_v25, %v1581_v30 }
 0x452   : > { %v1611_v59 = vadd.f32 %v1582_v38, %v3177_v63 }
 0x454   : > { %1627 = vst [vmem:[%s3284_s3 + $0x38] sm:$0xff] %v1611_v59  ;;  %v1643_v60 = vmax.f32 %v1611_v59, 0.0 }
 0x456   : > { %v1655_v61 = vpack.c.bf16 %v1643_v60, %v1642_v54 }
 0x457   : > { %v1584_v53 = vpop.f32.mrf.mxu2 }
 0x458   : > { %v1585_v62 = vadd.f32 %v3278_v25, %v1584_v53  ;;  %1751 = vmatmul.bf16.gmra.mxu3 %v1655_v61 }
 0x45a   : > { %v1612_v51 = vadd.f32 %v1585_v62, %v3185_v57 }
 0x45c   : > { %1628 = vst [vmem:[%s3284_s3 + $0x40] sm:$0xff] %v1612_v51  ;;  %v1644_v2 = vmax.f32 %v1612_v51, 0.0 }
 0x45f   : > { %v1586_v45 = vpop.f32.mrf.mxu2 }
 0x460   : > { %v1587_v17 = vadd.f32 %v3278_v25, %v1586_v45 }
 0x462   : > { %v1613_v1 = vadd.f32 %v1587_v17, %v3189_v16 }
 0x464   : > { %1629 = vst [vmem:[%s3284_s3 + $0x48] sm:$0xff] %v1613_v1  ;;  %v1645_v63 = vmax.f32 %v1613_v1, 0.0 }
 0x466   : > { %v1656_v48 = vpack.c.bf16 %v1645_v63, %v1644_v2 }
 0x467   : > { %v1589_v4 = vpop.f32.mrf.mxu2 }
 0x468   : > { %v1590_v8 = vadd.f32 %v3278_v25, %v1589_v4  ;;  %1756 = vmatmul.bf16.gmra.mxu3 %v1656_v48 }
 0x46a   : > { %v1614_v46 = vadd.f32 %v1590_v8, %v3197_v5 }
 0x46c   : > { %1630 = vst [vmem:[%s3284_s3 + $0x50] sm:$0xff] %v1614_v46  ;;  %v1646_v13 = vmax.f32 %v1614_v46, 0.0 }
 0x46f   : > { %v1591_v57 = vpop.f32.mrf.mxu2 }
 0x470   : > { %v1592_v10 = vadd.f32 %v3278_v25, %v1591_v57 }
 0x472   : > { %v1615_v11 = vadd.f32 %v1592_v10, %v3201_v12 }
 0x474   : > { %1631 = vst [vmem:[%s3284_s3 + $0x58] sm:$0xff] %v1615_v11  ;;  %v1647_v16 = vmax.f32 %v1615_v11, 0.0 }
 0x476   : > { %v1657_v15 = vpack.c.bf16 %v1647_v16, %v1646_v13 }
 0x477   : > { %v1594_v18 = vpop.f32.mrf.mxu2 }
 0x478   : > { %v1595_v26 = vadd.f32 %v3278_v25, %v1594_v18  ;;  %1761 = vmatmul.bf16.gmra.mxu3 %v1657_v15 }
 0x47a   : > { %v1616_v3 = vadd.f32 %v1595_v26, %v3209_v50 }
 0x47c   : > { %1632 = vst [vmem:[%s3284_s3 + $0x60] sm:$0xff] %v1616_v3  ;;  %v1648_v7 = vmax.f32 %v1616_v3, 0.0 }
 0x47f   : > { %v1596_v5 = vpop.f32.mrf.mxu2 }
 0x480   : > { %v1597_v29 = vadd.f32 %v3278_v25, %v1596_v5 }
 0x482   : > { %v1617_v55 = vadd.f32 %v1597_v29, %v3213_v22 }
 0x484   : > { %1633 = vst [vmem:[%s3284_s3 + $0x68] sm:$0xff] %v1617_v55  ;;  %v1649_v12 = vmax.f32 %v1617_v55, 0.0 }
 0x486   : > { %v1658_v44 = vpack.c.bf16 %v1649_v12, %v1648_v7 }
 0x487   : > { %v1599_v31 = vpop.f32.mrf.mxu2 }
 0x488   : > { %v1600_v32 = vadd.f32 %v3278_v25, %v1599_v31  ;;  %1766 = vmatmul.bf16.gmra.mxu3 %v1658_v44 }
 0x48a   : > { %v1618_v33 = vadd.f32 %v1600_v32, %v3221_v58 }
 0x48c   : > { %1634 = vst [vmem:[%s3284_s3 + $0x70] sm:$0xff] %v1618_v33  ;;  %v1650_v22 = vmax.f32 %v1618_v33, 0.0 }
 0x48f   : > { %v1601_v50 = vpop.f32.mrf.mxu2 }
 0x490   : > { %v1602_v34 = vadd.f32 %v3278_v25, %v1601_v50 }
 0x492   : > { %v1619_v9 = vadd.f32 %v1602_v34, %v3225_v37 }
 0x494   : > { %1635 = vst [vmem:[%s3284_s3 + $0x78] sm:$0xff] %v1619_v9  ;;  %v1651_v36 = vmax.f32 %v1619_v9, 0.0 }
 0x496   : > { %v1659_v21 = vpack.c.bf16 %v1651_v36, %v1650_v22 }
 0x498   : > { %1771 = vmatmul.bf16.gmra.mxu3 %v1659_v21 }
 0x499   : > { %2565 = shalt.err (!%p2562_p9)
}
 0x49a   : > { %s2630_s12 = smov 128   ;;  %s2631_s3 = smov 8   ;;  %v2477_v58 = vld [vmem:[%s3421_s9] ss:$0 sm:$0xff]  ;;  %vm1777_vm1 = vcmask 523264  }
 0x49b   : > { %2395 = dma.vmem_to_hbm [thread:$0]  (%p2732_p4), %s1823_s15, 2048, %s1825_s30, %s1804_s13, %s2630_s12, %s2630_s12, %s2631_s3  }
 0x49c   : > { %s2316_s28 = sshll.u32 %s2777_s25, 7 }
 0x49d   : > { %s3356_s1 = scalar_lea.vmem %s3422_s10, %s2316_s28 }
 0x4ab   : > { %v1737_v37 = vpop.f32.mrf.mxu3 }
 0x4ac   : > { %v1738_v25 = vadd.f32 %v2477_v58, %v1737_v37 }
 0x4ae   : > { %1778 = vst.msk [vmem:[%s3356_s1] sm:$0xff] %vm1777_vm1, %v1738_v25 }
 0x4b3   : > { %v1739_v40 = vpop.f32.mrf.mxu3 }
 0x4b4   : > { %v1740_v43 = vadd.f32 %v2477_v58, %v1739_v40 }
 0x4b6   : > { %1779 = vst.msk [vmem:[%s3356_s1 + $0x8] sm:$0xff] %vm1777_vm1, %v1740_v43 }
 0x4bb   : > { %v1742_v0 = vpop.f32.mrf.mxu3 }
 0x4bc   : > { %v1743_v47 = vadd.f32 %v2477_v58, %v1742_v0 }
 0x4be   : > { %1780 = vst.msk [vmem:[%s3356_s1 + $0x10] sm:$0xff] %vm1777_vm1, %v1743_v47 }
 0x4c3   : > { %v1744_v27 = vpop.f32.mrf.mxu3 }
 0x4c4   : > { %v1745_v20 = vadd.f32 %v2477_v58, %v1744_v27 }
 0x4c6   : > { %1781 = vst.msk [vmem:[%s3356_s1 + $0x18] sm:$0xff] %vm1777_vm1, %v1745_v20 }
 0x4cb   : > { %v1747_v49 = vpop.f32.mrf.mxu3 }
 0x4cc   : > { %v1748_v19 = vadd.f32 %v2477_v58, %v1747_v49 }
 0x4ce   : > { %1782 = vst.msk [vmem:[%s3356_s1 + $0x20] sm:$0xff] %vm1777_vm1, %v1748_v19 }
 0x4d3   : > { %v1749_v28 = vpop.f32.mrf.mxu3 }
 0x4d4   : > { %v1750_v24 = vadd.f32 %v2477_v58, %v1749_v28 }
 0x4d6   : > { %1783 = vst.msk [vmem:[%s3356_s1 + $0x28] sm:$0xff] %vm1777_vm1, %v1750_v24 }
 0x4db   : > { %v1752_v14 = vpop.f32.mrf.mxu3 }
 0x4dc   : > { %v1753_v23 = vadd.f32 %v2477_v58, %v1752_v14 }
 0x4de   : > { %1784 = vst.msk [vmem:[%s3356_s1 + $0x30] sm:$0xff] %vm1777_vm1, %v1753_v23 }
 0x4e3   : > { %v1754_v52 = vpop.f32.mrf.mxu3 }
 0x4e4   : > { %v1755_v42 = vadd.f32 %v2477_v58, %v1754_v52 }
 0x4e6   : > { %1785 = vst.msk [vmem:[%s3356_s1 + $0x38] sm:$0xff] %vm1777_vm1, %v1755_v42 }
 0x4eb   : > { %v1757_v39 = vpop.f32.mrf.mxu3 }
 0x4ec   : > { %v1758_v56 = vadd.f32 %v2477_v58, %v1757_v39 }
 0x4ee   : > { %1786 = vst.msk [vmem:[%s3356_s1 + $0x40] sm:$0xff] %vm1777_vm1, %v1758_v56 }
 0x4f3   : > { %v1759_v35 = vpop.f32.mrf.mxu3 }
 0x4f4   : > { %v1760_v41 = vadd.f32 %v2477_v58, %v1759_v35 }
 0x4f6   : > { %1787 = vst.msk [vmem:[%s3356_s1 + $0x48] sm:$0xff] %vm1777_vm1, %v1760_v41 }
 0x4fb   : > { %v1762_v6 = vpop.f32.mrf.mxu3 }
 0x4fc   : > { %v1763_v30 = vadd.f32 %v2477_v58, %v1762_v6 }
 0x4fe   : > { %1788 = vst.msk [vmem:[%s3356_s1 + $0x50] sm:$0xff] %vm1777_vm1, %v1763_v30 }
 0x503   : > { %v1764_v38 = vpop.f32.mrf.mxu3 }
 0x504   : > { %v1765_v59 = vadd.f32 %v2477_v58, %v1764_v38 }
 0x506   : > { %1789 = vst.msk [vmem:[%s3356_s1 + $0x58] sm:$0xff] %vm1777_vm1, %v1765_v59 }
 0x50b   : > { %v1767_v54 = vpop.f32.mrf.mxu3 }
 0x50c   : > { %v1768_v60 = vadd.f32 %v2477_v58, %v1767_v54 }
 0x50e   : > { %1790 = vst.msk [vmem:[%s3356_s1 + $0x60] sm:$0xff] %vm1777_vm1, %v1768_v60 }
 0x513   : > { %v1769_v61 = vpop.f32.mrf.mxu3 }
 0x514   : > { %v1770_v53 = vadd.f32 %v2477_v58, %v1769_v61 }
 0x516   : > { %1791 = vst.msk [vmem:[%s3356_s1 + $0x68] sm:$0xff] %vm1777_vm1, %v1770_v53 }
 0x51b   : > { %v1772_v62 = vpop.f32.mrf.mxu3 }
 0x51c   : > { %v1773_v51 = vadd.f32 %v2477_v58, %v1772_v62 }
 0x51e   : > { %1792 = vst.msk [vmem:[%s3356_s1 + $0x70] sm:$0xff] %vm1777_vm1, %v1773_v51 }
 0x523   : > { %v1774_v45 = vpop.f32.mrf.mxu3 }
 0x524   : > { %v1775_v17 = vadd.f32 %v2477_v58, %v1774_v45 }
 0x526   : > { %1793 = vst.msk [vmem:[%s3356_s1 + $0x78] sm:$0xff] %vm1777_vm1, %v1775_v17 }
 0x527 PF: > { %p2412_p4 = scmp.ge.s32.totalorder %s2624_s22, 2  ;;  %s1851_s27 = sand.u32 1, %s2604_s17  }
 0x528   : > { %s1852_s25 = scalar_lea.sflag [#allocation4], %s1851_s27 }
 0x529   : > { %p2405_p10 = pnand %p2412_p4, %p2739_p8 }
 0x52b   : > { %p2406_p11 = pneg %p2405_p10 }
 0x52d   : > { %2599 = dma.done.wait (%p2406_p11), %s1852_s25, 2048  }
 0x52e   : > { %2601 = vsyncadd (%p2406_p11), %s1852_s25, 4294965248  ;;  %s27_s22 = sadd.s32 1, %s2624_s22   ;;  %s3439_s15 = sld [smem:[#allocation13_spill]] }
 0x52f   : > { %p24_p12 = scmp.ge.s32.totalorder %s27_s22, 4   ;;  %s3440_s20 = sld [smem:[#allocation11_spill]] }
 0x530   : > { %s3441_s21 = sld [smem:[#allocation12_spill]]  ;;  %s3442_s17 = smov %s2608_s18 }
 0x531   : > { %s3443_s18 = smov %s2612_s19  ;;  %26 = sbr.rel (!%p24_p12) target bundleno = 10 (0xa), region = 127 }
 0x534   : > { %s3444_s19 = smov %s3439_s15 }
 0x536   :  { %1858 = vsyncpa [#allocation3], 1 }
 0x537   :  { %1860 = vsyncpa [#allocation3 + $0x1], 1 }
 0x538   :  { %1861 = vsyncpa [#allocation6], 1 }
 0x539   :  { %1862 = vsyncpa [#allocation4], 1 }
 0x53a   :  { %1864 = vsyncpa [#allocation4 + $0x1], 1 }

</bundles_post_ra>
